<compile_context>
chip_gen: v5e
topology: v5e:2x2
jax: 0.10.0
libtpu: 0.0.40
codegen_flags: <defaults>
</compile_context>

<pallas_src>
import math

import jax
import jax.numpy as jnp
from jax.experimental import pallas as pl
from jax.experimental.pallas import tpu as pltpu


# ----------------------------------------------------------------------------
# Kernel
# ----------------------------------------------------------------------------
def _layernorm(x, w, b, eps=1e-5):
    mu = jnp.mean(x, axis=-1, keepdims=True)
    var = jnp.mean((x - mu) ** 2, axis=-1, keepdims=True)   # biased var (PyTorch LN)
    return (x - mu) * jax.lax.rsqrt(var + eps) * w + b


def _make_kernel(nhead: int, head_dim: int, d_model: int):
    scale = 1.0 / math.sqrt(head_dim)
    D = d_model
    mxu = jnp.bfloat16  # MXU operand dtype (f32 accumulation everywhere)

    def kernel(xso_ref, pe_ref, vecs_ref, b1_ref,
               w_in_ref, wqkv_ref, wo_ref, w1_ref, w2_ref,
               out_ref):
        Bb, L, D2 = xso_ref.shape          # (batch-block, seq, 2*D), bf16
        rows = Bb * L

        # vecs rows: 0 bl | 1 bq | 2 bk | 3 bv | 4 bo | 5 ln1w | 6 ln1b
        #            7 b2 | 8 ln2w | 9 ln2b            (all f32, shape (1, D))

        # ---- fused input Linear(2D -> D) + positional encoding -------------
        x2 = xso_ref[...].reshape(rows, D2)                     # already bf16
        y = jnp.dot(x2, w_in_ref[...], preferred_element_type=jnp.float32)
        y = y + vecs_ref[0:1, :]
        y = (y.reshape(Bb, L, D) + pe_ref[...]).reshape(rows, D)   # f32

        # ---- fused QKV projection: one (rows, D) @ (D, 3D) matmul ----------
        qkv = jnp.dot(y.astype(mxu), wqkv_ref[...],
                      preferred_element_type=jnp.float32)
        q = ((qkv[:, :D] + vecs_ref[1:2, :]) * scale).reshape(Bb, L, D)  # scale folded in
        k = (qkv[:, D:2 * D] + vecs_ref[2:3, :]).reshape(Bb, L, D)
        v = (qkv[:, 2 * D:] + vecs_ref[3:4, :]).reshape(Bb, L, D)

        # ---- attention core (f32): tiny (L, hd) einsums, batched over Bb ---
        # head contexts kept as values and concatenated (no VMEM scratch, no
        # masked lane-slice stores, no store->load round trip before Wo).
        ctx_heads = []
        for h in range(nhead):             # static, unrolled (H small)
            sl = slice(h * head_dim, (h + 1) * head_dim)
            s = jnp.einsum("bqd,bkd->bqk", q[:, :, sl], k[:, :, sl],
                           preferred_element_type=jnp.float32)
            s = s - jnp.max(s, axis=-1, keepdims=True)
            p = jnp.exp(s)
            p = p * pl.reciprocal(jnp.sum(p, axis=-1, keepdims=True), approx=True)
            ctx_heads.append(
                jnp.einsum("bqk,bkd->bqd", p, v[:, :, sl],
                           preferred_element_type=jnp.float32))
        ctx = jnp.concatenate(ctx_heads, axis=-1).reshape(rows, D).astype(mxu)

        # single output projection over concat(heads)
        attn = jnp.dot(ctx, wo_ref[...],
                       preferred_element_type=jnp.float32) + vecs_ref[4:5, :]

        # residual + LayerNorm 1 (post-LN, f32)
        z = _layernorm(y + attn, vecs_ref[5:6, :], vecs_ref[6:7, :])

        # ---- feed-forward (ReLU) --------------------------------------------
        f = jnp.dot(z.astype(mxu), w1_ref[...],
                    preferred_element_type=jnp.float32) + b1_ref[...]
        f = jnp.maximum(f, 0.0)
        f = jnp.dot(f.astype(mxu), w2_ref[...],
                    preferred_element_type=jnp.float32) + vecs_ref[7:8, :]

        out = _layernorm(z + f, vecs_ref[8:9, :], vecs_ref[9:10, :])
        out_ref[...] = out.reshape(Bb, L, D).astype(out_ref.dtype)

    return kernel


# ----------------------------------------------------------------------------
# VMEM budget / batch-block sizing
# ----------------------------------------------------------------------------
def _vmem_limit_bytes():
    cap = 64 << 20                     # conservative default (v7x per-core VMEM)
    try:
        info = pltpu.get_tpu_info()
        cap = int(getattr(info, "vmem_capacity_bytes", cap) or cap)
    except Exception:
        pass
    # ~56 MiB on a 64 MiB part, 100 MiB on 128 MiB parts (v5e/v6e).
    return int(max(32 << 20, min(100 << 20, cap - (8 << 20))))


def _choose_bblk(B, L, D, F, const_bytes, vmem_budget):
    # Fill the MXU M dimension (~256 rows) per grid step when VMEM allows.
    bblk = max(1, min(B, max(1, 256 // L)))
    # v7x has 2 TensorCores: never leave one idle when B > 1.
    if B > 1 and pl.cdiv(B, bblk) == 1:
        bblk = pl.cdiv(B, 2)
    # Shrink until the per-step working set fits the VMEM budget.
    while bblk > 1:
        rows = bblk * L
        act_bytes = (rows * 2 * D * 2 * 2        # xs|obs bf16 input, double-buffered
                     + rows * D * 4 * 2          # f32 output, double-buffered
                     + rows * (6 * D + F) * 4)   # live f32 intermediates (rough)
        if const_bytes + act_bytes <= vmem_budget:
            break
        bblk = max(1, bblk // 2)
    return bblk


# ----------------------------------------------------------------------------
# One-time parameter packing (do NOT do this per forward call)
# ----------------------------------------------------------------------------
def pack_params(p):
    mxu = jnp.bfloat16
    vecs = jnp.concatenate(
        [p["bl"], p["bq"], p["bk"], p["bv"], p["bo"],
         p["ln1w"], p["ln1b"], p["b2"], p["ln2w"], p["ln2b"]], axis=0)   # (10, D) f32
    return dict(
        pe=p["pe"],                                                      # (L, D)  f32
        vecs=vecs,
        b1=p["b1"],                                                      # (1, F)  f32
        w_in=jnp.concatenate([p["wa"], p["wb"]], axis=0).astype(mxu),    # (2D, D) bf16
        wqkv=jnp.concatenate([p["wq"], p["wk"], p["wv"]], axis=1).astype(mxu),  # (D, 3D)
        wo=p["wo"].astype(mxu),
        w1=p["w1"].astype(mxu),
        w2=p["w2"].astype(mxu),
    )


# ----------------------------------------------------------------------------
# Wrapper
# ----------------------------------------------------------------------------
def transformer_ts_mapping_block(xs, obs, packed, *, nhead):
    B, L, D = xs.shape
    F = packed["w1"].shape[1]
    head_dim = D // nhead

    consts = (packed["pe"], packed["vecs"], packed["b1"], packed["w_in"],
              packed["wqkv"], packed["wo"], packed["w1"], packed["w2"])
    const_bytes = sum(int(a.size) * a.dtype.itemsize for a in consts)

    vmem_limit = _vmem_limit_bytes()
    bblk = _choose_bblk(B, L, D, F, const_bytes, vmem_limit)
    grid_b = pl.cdiv(B, bblk)
    b_pad = grid_b * bblk

    # Concatenate xs/obs once and cast to bf16: halves the per-step input DMA
    # and feeds the MXU directly (accumulation stays f32 in-kernel).
    xso = jnp.concatenate([xs, obs], axis=-1).astype(jnp.bfloat16)
    if b_pad != B:
        xso = jnp.pad(xso, ((0, b_pad - B), (0, 0), (0, 0)))

    kernel = _make_kernel(nhead, head_dim, D)

    def run(single_buffer_consts):
        def const_spec(shape):
            idx = lambda b: (0,) * len(shape)
            if single_buffer_consts:
                # Grid-invariant blocks: fetched once, no need to double-buffer.
                return pl.BlockSpec(shape, idx, pipeline_mode=pl.Buffered(1))
            return pl.BlockSpec(shape, idx)

        grid_spec = pltpu.PrefetchScalarGridSpec(
            num_scalar_prefetch=0,
            grid=(grid_b,),
            in_specs=[
                pl.BlockSpec((bblk, L, 2 * D), lambda b: (b, 0, 0)),  # xs|obs (bf16)
                const_spec((L, D)),          # positional encoding
                const_spec((10, D)),         # packed bias / LayerNorm vectors
                const_spec((1, F)),          # FFN bias 1
                const_spec((2 * D, D)),      # W_in  (bf16)
                const_spec((D, 3 * D)),      # W_qkv (bf16)
                const_spec((D, D)),          # W_o   (bf16)
                const_spec((D, F)),          # W_1   (bf16)
                const_spec((F, D)),          # W_2   (bf16)
            ],
            out_specs=pl.BlockSpec((bblk, L, D), lambda b: (b, 0, 0)),
        )
        return pl.pallas_call(
            kernel,
            out_shape=jax.ShapeDtypeStruct((b_pad, L, D), xs.dtype),
            grid_spec=grid_spec,
            compiler_params=pltpu.CompilerParams(
                dimension_semantics=("parallel",),   # batch blocks independent
                vmem_limit_bytes=vmem_limit),
        )(xso, packed["pe"], packed["vecs"], packed["b1"], packed["w_in"],
          packed["wqkv"], packed["wo"], packed["w1"], packed["w2"])

    try:
        out = run(True)
    except Exception:
        # This Pallas build rejected Buffered(1) on constant blocks — fall back
        # to default double-buffering (correctness identical, more VMEM).
        out = run(False)

    return out[:B] if b_pad != B else out


# ----------------------------------------------------------------------------
# Deterministic synthetic parameters (module-shaped, stored (in, out) so x @ W).
# ----------------------------------------------------------------------------
def make_params(key, *, d_model, nhead, dim_feedforward, sequence_length, bias):
    D, F, L = d_model, dim_feedforward, sequence_length
    keys = jax.random.split(key, 12)

    def w(k, shape, fan_in):
        return jax.random.normal(k, shape, jnp.float32) / math.sqrt(fan_in)

    # sinusoidal positional encoding (base 100.0, as in the module)
    pos = jnp.arange(L, dtype=jnp.float32)[:, None]
    div = jnp.exp(jnp.arange(0, D, 2, dtype=jnp.float32) * -(math.log(100.0) / D))
    pe = jnp.zeros((L, D), jnp.float32)
    pe = pe.at[:, 0::2].set(jnp.sin(pos * div))
    pe = pe.at[:, 1::2].set(jnp.cos(pos * div))

    w_lin = w(keys[0], (2 * D, D), 2 * D)      # Linear(2D -> D)
    return dict(
        pe=pe,
        wa=w_lin[:D, :], wb=w_lin[D:, :],
        bl=(w(keys[1], (1, D), 2 * D) if bias else jnp.zeros((1, D), jnp.float32)),
        wq=w(keys[2], (D, D), D), wk=w(keys[3], (D, D), D), wv=w(keys[4], (D, D), D),
        bq=w(keys[5], (1, D), D) * 0.1, bk=w(keys[6], (1, D), D) * 0.1,
        bv=w(keys[7], (1, D), D) * 0.1,
        wo=w(keys[8], (D, D), D), bo=jnp.zeros((1, D), jnp.float32),
        ln1w=jnp.ones((1, D), jnp.float32), ln1b=jnp.zeros((1, D), jnp.float32),
        w1=w(keys[9], (D, F), D), b1=w(keys[10], (1, F), D) * 0.1,
        w2=w(keys[11], (F, D), F), b2=jnp.zeros((1, D), jnp.float32),
        ln2w=jnp.ones((1, D), jnp.float32), ln2b=jnp.zeros((1, D), jnp.float32),
    )


# Pure-JAX reference. mxu_dtype=None -> full f32; mxu_dtype=bfloat16 mirrors the
# kernel's MXU operand precision (accumulation always f32).
def reference_forward(xs, obs, p, *, nhead, mxu_dtype=None):
    def mm(a, b):
        if mxu_dtype is not None:
            a, b = a.astype(mxu_dtype), b.astype(mxu_dtype)
        return jnp.dot(a, b, preferred_element_type=jnp.float32)

    def ln(x, w, b, eps=1e-5):
        mu = x.mean(-1, keepdims=True)
        var = ((x - mu) ** 2).mean(-1, keepdims=True)
        return (x - mu) * jax.lax.rsqrt(var + eps) * w + b

    B, L, D = xs.shape
    hd = D // nhead
    cat = jnp.concatenate([xs, obs], axis=-1)
    w_in = jnp.concatenate([p["wa"], p["wb"]], axis=0)
    y = mm(cat, w_in) + p["bl"] + p["pe"]

    wqkv = jnp.concatenate([p["wq"], p["wk"], p["wv"]], axis=1)
    qkv = mm(y, wqkv)
    q = (qkv[..., :D] + p["bq"]).reshape(B, L, nhead, hd).transpose(0, 2, 1, 3)
    k = (qkv[..., D:2 * D] + p["bk"]).reshape(B, L, nhead, hd).transpose(0, 2, 1, 3)
    v = (qkv[..., 2 * D:] + p["bv"]).reshape(B, L, nhead, hd).transpose(0, 2, 1, 3)
    s = jnp.einsum("bhqd,bhkd->bhqk", q, k) / math.sqrt(hd)
    a = jax.nn.softmax(s, axis=-1)
    o = jnp.einsum("bhqk,bhkd->bhqd", a, v).transpose(0, 2, 1, 3).reshape(B, L, D)
    o = mm(o, p["wo"]) + p["bo"]
    z = ln(y + o, p["ln1w"], p["ln1b"])
    f = mm(jax.nn.relu(mm(z, p["w1"]) + p["b1"]), p["w2"]) + p["b2"]
    return ln(z + f, p["ln2w"], p["ln2b"])


if __name__ == "__main__":
    # small shapes consistent with the module
    B, L, D, H, F = 2, 8, 32, 4, 64   # batch, sequence_length, d_model, nhead, dim_ff
    key = jax.random.PRNGKey(0)
    k_xs, k_obs, k_par = jax.random.split(key, 3)

    xs = jax.random.normal(k_xs, (B, L, D), jnp.float32)
    obs = jax.random.normal(k_obs, (B, L, D), jnp.float32)
    params = make_params(k_par, d_model=D, nhead=H, dim_feedforward=F,
                         sequence_length=L, bias=True)
    packed = pack_params(params)      # one-time weight fusion / bf16 cast

    out = jax.block_until_ready(
        transformer_ts_mapping_block(xs, obs, packed, nhead=H))
    assert out.shape == (B, L, D)

    # Tight check vs a reference using the same bf16 MXU-operand precision.
    ref_bf = jax.block_until_ready(
        reference_forward(xs, obs, params, nhead=H, mxu_dtype=jnp.bfloat16))
    # Looser sanity check vs the pure-f32 reference (delta = bf16 operand rounding).
    ref_f32 = jax.block_until_ready(
        reference_forward(xs, obs, params, nhead=H, mxu_dtype=None))

    err_bf = float(jnp.max(jnp.abs(out - ref_bf)))
    err_f32 = float(jnp.max(jnp.abs(out - ref_f32)))
    assert jnp.allclose(out, ref_bf, rtol=1e-2, atol=1e-2), (
        f"mismatch vs bf16-operand reference: max abs err = {err_bf}")
    assert jnp.allclose(out, ref_f32, rtol=5e-2, atol=5e-2), (
        f"mismatch vs f32 reference: max abs err = {err_f32}")

    print("KERNEL_OK")
</pallas_src>

<mosaic_0001>
module attributes {stable_mosaic.version = 11 : i64} {
  func.func @kernel(%arg0: i32, %arg1: memref<1x8x64xbf16, #tpu.memory_space<vmem>>, %arg2: memref<8x32xf32, #tpu.memory_space<vmem>>, %arg3: memref<10x32xf32, #tpu.memory_space<vmem>>, %arg4: memref<1x64xf32, #tpu.memory_space<vmem>>, %arg5: memref<64x32xbf16, #tpu.memory_space<vmem>>, %arg6: memref<32x96xbf16, #tpu.memory_space<vmem>>, %arg7: memref<32x32xbf16, #tpu.memory_space<vmem>>, %arg8: memref<32x64xbf16, #tpu.memory_space<vmem>>, %arg9: memref<64x32xbf16, #tpu.memory_space<vmem>>, %arg10: memref<1x8x32xf32, #tpu.memory_space<vmem>>) attributes {dimension_semantics = [#tpu.dimension_semantics<parallel>], iteration_bounds = array<i64: 2>, scalar_prefetch = 0 : i64, scratch_operands = 0 : i64, tpu.core_type = #tpu.core_type<tc>, window_params = [{transform_indices = @transform_0, window_bounds = array<i64: 1, 8, 64>}, {pipeline_mode = #tpu.pipeline_mode<synchronous>, transform_indices = @transform_1, window_bounds = array<i64: 8, 32>}, {pipeline_mode = #tpu.pipeline_mode<synchronous>, transform_indices = @transform_2, window_bounds = array<i64: 10, 32>}, {pipeline_mode = #tpu.pipeline_mode<synchronous>, transform_indices = @transform_3, window_bounds = array<i64: 1, 64>}, {pipeline_mode = #tpu.pipeline_mode<synchronous>, transform_indices = @transform_4, window_bounds = array<i64: 64, 32>}, {pipeline_mode = #tpu.pipeline_mode<synchronous>, transform_indices = @transform_5, window_bounds = array<i64: 32, 96>}, {pipeline_mode = #tpu.pipeline_mode<synchronous>, transform_indices = @transform_6, window_bounds = array<i64: 32, 32>}, {pipeline_mode = #tpu.pipeline_mode<synchronous>, transform_indices = @transform_7, window_bounds = array<i64: 32, 64>}, {pipeline_mode = #tpu.pipeline_mode<synchronous>, transform_indices = @transform_8, window_bounds = array<i64: 64, 32>}, {transform_indices = @transform_9, window_bounds = array<i64: 1, 8, 32>}]} {
    %c0 = arith.constant 0 : index
    %c0_0 = arith.constant 0 : index
    %c0_1 = arith.constant 0 : index
    %0 = vector.load %arg1[%c0, %c0_0, %c0_1] : memref<1x8x64xbf16, #tpu.memory_space<vmem>>, vector<1x8x64xbf16>
    %1 = vector.shape_cast %0 : vector<1x8x64xbf16> to vector<8x64xbf16>
    %c0_2 = arith.constant 0 : index
    %c0_3 = arith.constant 0 : index
    %2 = vector.load %arg5[%c0_2, %c0_3] : memref<64x32xbf16, #tpu.memory_space<vmem>>, vector<64x32xbf16>
    %cst = arith.constant dense<0.000000e+00> : vector<8x32xf32>
    %3 = tpu.matmul %1, %2, %cst {dimension_numbers = #tpu.dot_dimension_numbers<[1], [0], [0], [1], [0, 0, 1, 1], [], []>} : vector<8x64xbf16>, vector<64x32xbf16>, vector<8x32xf32> -> vector<8x32xf32>
    %c0_4 = arith.constant 0 : index
    %c0_5 = arith.constant 0 : index
    %4 = vector.load %arg3[%c0_4, %c0_5] : memref<10x32xf32, #tpu.memory_space<vmem>>, vector<1x32xf32>
    %5 = vector.broadcast %4 : vector<1x32xf32> to vector<8x32xf32>
    %6 = arith.addf %3, %5 : vector<8x32xf32>
    %7 = vector.shape_cast %6 : vector<8x32xf32> to vector<1x8x32xf32>
    %c0_6 = arith.constant 0 : index
    %c0_7 = arith.constant 0 : index
    %8 = vector.load %arg2[%c0_6, %c0_7] : memref<8x32xf32, #tpu.memory_space<vmem>>, vector<8x32xf32>
    %9 = vector.shape_cast %8 : vector<8x32xf32> to vector<1x8x32xf32>
    %10 = arith.addf %7, %9 : vector<1x8x32xf32>
    %11 = vector.shape_cast %10 : vector<1x8x32xf32> to vector<8x32xf32>
    %12 = arith.truncf %11 : vector<8x32xf32> to vector<8x32xbf16>
    %c0_8 = arith.constant 0 : index
    %c0_9 = arith.constant 0 : index
    %13 = vector.load %arg6[%c0_8, %c0_9] : memref<32x96xbf16, #tpu.memory_space<vmem>>, vector<32x96xbf16>
    %cst_10 = arith.constant dense<0.000000e+00> : vector<8x96xf32>
    %14 = tpu.matmul %12, %13, %cst_10 {dimension_numbers = #tpu.dot_dimension_numbers<[1], [0], [0], [1], [0, 0, 1, 1], [], []>} : vector<8x32xbf16>, vector<32x96xbf16>, vector<8x96xf32> -> vector<8x96xf32>
    %15 = vector.extract_strided_slice %14 {offsets = [0, 0], sizes = [8, 32], strides = [1, 1]} : vector<8x96xf32> to vector<8x32xf32>
    %c1 = arith.constant 1 : index
    %c0_11 = arith.constant 0 : index
    %16 = vector.load %arg3[%c1, %c0_11] : memref<10x32xf32, #tpu.memory_space<vmem>>, vector<1x32xf32>
    %17 = vector.broadcast %16 : vector<1x32xf32> to vector<8x32xf32>
    %18 = arith.addf %15, %17 : vector<8x32xf32>
    %cst_12 = arith.constant 0.353553385 : f32
    %19 = vector.broadcast %cst_12 : f32 to vector<8x32xf32>
    %20 = arith.mulf %18, %19 : vector<8x32xf32>
    %21 = vector.shape_cast %20 : vector<8x32xf32> to vector<1x8x32xf32>
    %22 = vector.extract_strided_slice %14 {offsets = [0, 32], sizes = [8, 32], strides = [1, 1]} : vector<8x96xf32> to vector<8x32xf32>
    %c2 = arith.constant 2 : index
    %c0_13 = arith.constant 0 : index
    %23 = vector.load %arg3[%c2, %c0_13] : memref<10x32xf32, #tpu.memory_space<vmem>>, vector<1x32xf32>
    %24 = vector.broadcast %23 : vector<1x32xf32> to vector<8x32xf32>
    %25 = arith.addf %22, %24 : vector<8x32xf32>
    %26 = vector.shape_cast %25 : vector<8x32xf32> to vector<1x8x32xf32>
    %27 = vector.extract_strided_slice %14 {offsets = [0, 64], sizes = [8, 32], strides = [1, 1]} : vector<8x96xf32> to vector<8x32xf32>
    %c3 = arith.constant 3 : index
    %c0_14 = arith.constant 0 : index
    %28 = vector.load %arg3[%c3, %c0_14] : memref<10x32xf32, #tpu.memory_space<vmem>>, vector<1x32xf32>
    %29 = vector.broadcast %28 : vector<1x32xf32> to vector<8x32xf32>
    %30 = arith.addf %27, %29 : vector<8x32xf32>
    %31 = vector.shape_cast %30 : vector<8x32xf32> to vector<1x8x32xf32>
    %32 = vector.extract_strided_slice %21 {offsets = [0, 0, 0], sizes = [1, 8, 8], strides = [1, 1, 1]} : vector<1x8x32xf32> to vector<1x8x8xf32>
    %33 = vector.extract_strided_slice %26 {offsets = [0, 0, 0], sizes = [1, 8, 8], strides = [1, 1, 1]} : vector<1x8x32xf32> to vector<1x8x8xf32>
    "tpu.trace_start"() <{level = 10 : i32, message = "bqd,bkd->bqk"}> : () -> ()
    %cst_15 = arith.constant dense<0.000000e+00> : vector<1x8x8xf32>
    %34 = tpu.matmul %32, %33, %cst_15 {dimension_numbers = #tpu.dot_dimension_numbers<[2], [2], [1], [1], [0, 0, 0, 1, 1, 1], [0], [0]>} : vector<1x8x8xf32>, vector<1x8x8xf32>, vector<1x8x8xf32> -> vector<1x8x8xf32>
    "tpu.trace_stop"() : () -> ()
    %cst_16 = arith.constant dense<0xFF800000> : vector<1x8xf32>
    %35 = vector.multi_reduction <maximumf>, %34, %cst_16 [2] : vector<1x8x8xf32> to vector<1x8xf32>
    %36 = vector.shape_cast %35 : vector<1x8xf32> to vector<1x8x1xf32>
    %37 = vector.broadcast %36 : vector<1x8x1xf32> to vector<1x8x8xf32>
    %38 = arith.subf %34, %37 : vector<1x8x8xf32>
    %39 = math.exp %38 : vector<1x8x8xf32>
    %cst_17 = arith.constant dense<0.000000e+00> : vector<1x8xf32>
    %40 = vector.multi_reduction <add>, %39, %cst_17 [2] : vector<1x8x8xf32> to vector<1x8xf32>
    %41 = vector.shape_cast %40 : vector<1x8xf32> to vector<1x8x1xf32>
    %42 = tpu.reciprocal %41 {approx = true} : vector<1x8x1xf32> -> vector<1x8x1xf32>
    %43 = vector.broadcast %42 : vector<1x8x1xf32> to vector<1x8x8xf32>
    %44 = arith.mulf %39, %43 : vector<1x8x8xf32>
    %45 = vector.extract_strided_slice %31 {offsets = [0, 0, 0], sizes = [1, 8, 8], strides = [1, 1, 1]} : vector<1x8x32xf32> to vector<1x8x8xf32>
    "tpu.trace_start"() <{level = 10 : i32, message = "bqk,bkd->bqd"}> : () -> ()
    %cst_18 = arith.constant dense<0.000000e+00> : vector<1x8x8xf32>
    %46 = tpu.matmul %44, %45, %cst_18 {dimension_numbers = #tpu.dot_dimension_numbers<[2], [1], [1], [2], [0, 0, 0, 1, 1, 2], [0], [0]>} : vector<1x8x8xf32>, vector<1x8x8xf32>, vector<1x8x8xf32> -> vector<1x8x8xf32>
    "tpu.trace_stop"() : () -> ()
    %47 = vector.extract_strided_slice %21 {offsets = [0, 0, 8], sizes = [1, 8, 8], strides = [1, 1, 1]} : vector<1x8x32xf32> to vector<1x8x8xf32>
    %48 = vector.extract_strided_slice %26 {offsets = [0, 0, 8], sizes = [1, 8, 8], strides = [1, 1, 1]} : vector<1x8x32xf32> to vector<1x8x8xf32>
    "tpu.trace_start"() <{level = 10 : i32, message = "bqd,bkd->bqk"}> : () -> ()
    %cst_19 = arith.constant dense<0.000000e+00> : vector<1x8x8xf32>
    %49 = tpu.matmul %47, %48, %cst_19 {dimension_numbers = #tpu.dot_dimension_numbers<[2], [2], [1], [1], [0, 0, 0, 1, 1, 1], [0], [0]>} : vector<1x8x8xf32>, vector<1x8x8xf32>, vector<1x8x8xf32> -> vector<1x8x8xf32>
    "tpu.trace_stop"() : () -> ()
    %cst_20 = arith.constant dense<0xFF800000> : vector<1x8xf32>
    %50 = vector.multi_reduction <maximumf>, %49, %cst_20 [2] : vector<1x8x8xf32> to vector<1x8xf32>
    %51 = vector.shape_cast %50 : vector<1x8xf32> to vector<1x8x1xf32>
    %52 = vector.broadcast %51 : vector<1x8x1xf32> to vector<1x8x8xf32>
    %53 = arith.subf %49, %52 : vector<1x8x8xf32>
    %54 = math.exp %53 : vector<1x8x8xf32>
    %cst_21 = arith.constant dense<0.000000e+00> : vector<1x8xf32>
    %55 = vector.multi_reduction <add>, %54, %cst_21 [2] : vector<1x8x8xf32> to vector<1x8xf32>
    %56 = vector.shape_cast %55 : vector<1x8xf32> to vector<1x8x1xf32>
    %57 = tpu.reciprocal %56 {approx = true} : vector<1x8x1xf32> -> vector<1x8x1xf32>
    %58 = vector.broadcast %57 : vector<1x8x1xf32> to vector<1x8x8xf32>
    %59 = arith.mulf %54, %58 : vector<1x8x8xf32>
    %60 = vector.extract_strided_slice %31 {offsets = [0, 0, 8], sizes = [1, 8, 8], strides = [1, 1, 1]} : vector<1x8x32xf32> to vector<1x8x8xf32>
    "tpu.trace_start"() <{level = 10 : i32, message = "bqk,bkd->bqd"}> : () -> ()
    %cst_22 = arith.constant dense<0.000000e+00> : vector<1x8x8xf32>
    %61 = tpu.matmul %59, %60, %cst_22 {dimension_numbers = #tpu.dot_dimension_numbers<[2], [1], [1], [2], [0, 0, 0, 1, 1, 2], [0], [0]>} : vector<1x8x8xf32>, vector<1x8x8xf32>, vector<1x8x8xf32> -> vector<1x8x8xf32>
    "tpu.trace_stop"() : () -> ()
    %62 = vector.extract_strided_slice %21 {offsets = [0, 0, 16], sizes = [1, 8, 8], strides = [1, 1, 1]} : vector<1x8x32xf32> to vector<1x8x8xf32>
    %63 = vector.extract_strided_slice %26 {offsets = [0, 0, 16], sizes = [1, 8, 8], strides = [1, 1, 1]} : vector<1x8x32xf32> to vector<1x8x8xf32>
    "tpu.trace_start"() <{level = 10 : i32, message = "bqd,bkd->bqk"}> : () -> ()
    %cst_23 = arith.constant dense<0.000000e+00> : vector<1x8x8xf32>
    %64 = tpu.matmul %62, %63, %cst_23 {dimension_numbers = #tpu.dot_dimension_numbers<[2], [2], [1], [1], [0, 0, 0, 1, 1, 1], [0], [0]>} : vector<1x8x8xf32>, vector<1x8x8xf32>, vector<1x8x8xf32> -> vector<1x8x8xf32>
    "tpu.trace_stop"() : () -> ()
    %cst_24 = arith.constant dense<0xFF800000> : vector<1x8xf32>
    %65 = vector.multi_reduction <maximumf>, %64, %cst_24 [2] : vector<1x8x8xf32> to vector<1x8xf32>
    %66 = vector.shape_cast %65 : vector<1x8xf32> to vector<1x8x1xf32>
    %67 = vector.broadcast %66 : vector<1x8x1xf32> to vector<1x8x8xf32>
    %68 = arith.subf %64, %67 : vector<1x8x8xf32>
    %69 = math.exp %68 : vector<1x8x8xf32>
    %cst_25 = arith.constant dense<0.000000e+00> : vector<1x8xf32>
    %70 = vector.multi_reduction <add>, %69, %cst_25 [2] : vector<1x8x8xf32> to vector<1x8xf32>
    %71 = vector.shape_cast %70 : vector<1x8xf32> to vector<1x8x1xf32>
    %72 = tpu.reciprocal %71 {approx = true} : vector<1x8x1xf32> -> vector<1x8x1xf32>
    %73 = vector.broadcast %72 : vector<1x8x1xf32> to vector<1x8x8xf32>
    %74 = arith.mulf %69, %73 : vector<1x8x8xf32>
    %75 = vector.extract_strided_slice %31 {offsets = [0, 0, 16], sizes = [1, 8, 8], strides = [1, 1, 1]} : vector<1x8x32xf32> to vector<1x8x8xf32>
    "tpu.trace_start"() <{level = 10 : i32, message = "bqk,bkd->bqd"}> : () -> ()
    %cst_26 = arith.constant dense<0.000000e+00> : vector<1x8x8xf32>
    %76 = tpu.matmul %74, %75, %cst_26 {dimension_numbers = #tpu.dot_dimension_numbers<[2], [1], [1], [2], [0, 0, 0, 1, 1, 2], [0], [0]>} : vector<1x8x8xf32>, vector<1x8x8xf32>, vector<1x8x8xf32> -> vector<1x8x8xf32>
    "tpu.trace_stop"() : () -> ()
    %77 = vector.extract_strided_slice %21 {offsets = [0, 0, 24], sizes = [1, 8, 8], strides = [1, 1, 1]} : vector<1x8x32xf32> to vector<1x8x8xf32>
    %78 = vector.extract_strided_slice %26 {offsets = [0, 0, 24], sizes = [1, 8, 8], strides = [1, 1, 1]} : vector<1x8x32xf32> to vector<1x8x8xf32>
    "tpu.trace_start"() <{level = 10 : i32, message = "bqd,bkd->bqk"}> : () -> ()
    %cst_27 = arith.constant dense<0.000000e+00> : vector<1x8x8xf32>
    %79 = tpu.matmul %77, %78, %cst_27 {dimension_numbers = #tpu.dot_dimension_numbers<[2], [2], [1], [1], [0, 0, 0, 1, 1, 1], [0], [0]>} : vector<1x8x8xf32>, vector<1x8x8xf32>, vector<1x8x8xf32> -> vector<1x8x8xf32>
    "tpu.trace_stop"() : () -> ()
    %cst_28 = arith.constant dense<0xFF800000> : vector<1x8xf32>
    %80 = vector.multi_reduction <maximumf>, %79, %cst_28 [2] : vector<1x8x8xf32> to vector<1x8xf32>
    %81 = vector.shape_cast %80 : vector<1x8xf32> to vector<1x8x1xf32>
    %82 = vector.broadcast %81 : vector<1x8x1xf32> to vector<1x8x8xf32>
    %83 = arith.subf %79, %82 : vector<1x8x8xf32>
    %84 = math.exp %83 : vector<1x8x8xf32>
    %cst_29 = arith.constant dense<0.000000e+00> : vector<1x8xf32>
    %85 = vector.multi_reduction <add>, %84, %cst_29 [2] : vector<1x8x8xf32> to vector<1x8xf32>
    %86 = vector.shape_cast %85 : vector<1x8xf32> to vector<1x8x1xf32>
    %87 = tpu.reciprocal %86 {approx = true} : vector<1x8x1xf32> -> vector<1x8x1xf32>
    %88 = vector.broadcast %87 : vector<1x8x1xf32> to vector<1x8x8xf32>
    %89 = arith.mulf %84, %88 : vector<1x8x8xf32>
    %90 = vector.extract_strided_slice %31 {offsets = [0, 0, 24], sizes = [1, 8, 8], strides = [1, 1, 1]} : vector<1x8x32xf32> to vector<1x8x8xf32>
    "tpu.trace_start"() <{level = 10 : i32, message = "bqk,bkd->bqd"}> : () -> ()
    %cst_30 = arith.constant dense<0.000000e+00> : vector<1x8x8xf32>
    %91 = tpu.matmul %89, %90, %cst_30 {dimension_numbers = #tpu.dot_dimension_numbers<[2], [1], [1], [2], [0, 0, 0, 1, 1, 2], [0], [0]>} : vector<1x8x8xf32>, vector<1x8x8xf32>, vector<1x8x8xf32> -> vector<1x8x8xf32>
    "tpu.trace_stop"() : () -> ()
    %92 = tpu.concatenate %46, %61, %76, %91 in 2 : vector<1x8x8xf32>, vector<1x8x8xf32>, vector<1x8x8xf32>, vector<1x8x8xf32> -> vector<1x8x32xf32>
    %93 = vector.shape_cast %92 : vector<1x8x32xf32> to vector<8x32xf32>
    %94 = arith.truncf %93 : vector<8x32xf32> to vector<8x32xbf16>
    %c0_31 = arith.constant 0 : index
    %c0_32 = arith.constant 0 : index
    %95 = vector.load %arg7[%c0_31, %c0_32] : memref<32x32xbf16, #tpu.memory_space<vmem>>, vector<32x32xbf16>
    %cst_33 = arith.constant dense<0.000000e+00> : vector<8x32xf32>
    %96 = tpu.matmul %94, %95, %cst_33 {dimension_numbers = #tpu.dot_dimension_numbers<[1], [0], [0], [1], [0, 0, 1, 1], [], []>} : vector<8x32xbf16>, vector<32x32xbf16>, vector<8x32xf32> -> vector<8x32xf32>
    %c4 = arith.constant 4 : index
    %c0_34 = arith.constant 0 : index
    %97 = vector.load %arg3[%c4, %c0_34] : memref<10x32xf32, #tpu.memory_space<vmem>>, vector<1x32xf32>
    %98 = vector.broadcast %97 : vector<1x32xf32> to vector<8x32xf32>
    %99 = arith.addf %96, %98 : vector<8x32xf32>
    %100 = arith.addf %11, %99 : vector<8x32xf32>
    %c5 = arith.constant 5 : index
    %c0_35 = arith.constant 0 : index
    %101 = vector.load %arg3[%c5, %c0_35] : memref<10x32xf32, #tpu.memory_space<vmem>>, vector<1x32xf32>
    %c6 = arith.constant 6 : index
    %c0_36 = arith.constant 0 : index
    %102 = vector.load %arg3[%c6, %c0_36] : memref<10x32xf32, #tpu.memory_space<vmem>>, vector<1x32xf32>
    %cst_37 = arith.constant dense<0.000000e+00> : vector<8xf32>
    %103 = vector.multi_reduction <add>, %100, %cst_37 [1] : vector<8x32xf32> to vector<8xf32>
    %104 = vector.shape_cast %103 : vector<8xf32> to vector<8x1xf32>
    %cst_38 = arith.constant 3.200000e+01 : f32
    %105 = vector.broadcast %cst_38 : f32 to vector<8x1xf32>
    %106 = arith.divf %104, %105 : vector<8x1xf32>
    %107 = vector.broadcast %106 : vector<8x1xf32> to vector<8x32xf32>
    %108 = arith.subf %100, %107 : vector<8x32xf32>
    %109 = arith.mulf %108, %108 : vector<8x32xf32>
    %cst_39 = arith.constant dense<0.000000e+00> : vector<8xf32>
    %110 = vector.multi_reduction <add>, %109, %cst_39 [1] : vector<8x32xf32> to vector<8xf32>
    %111 = vector.shape_cast %110 : vector<8xf32> to vector<8x1xf32>
    %cst_40 = arith.constant 3.200000e+01 : f32
    %112 = vector.broadcast %cst_40 : f32 to vector<8x1xf32>
    %113 = arith.divf %111, %112 : vector<8x1xf32>
    %114 = vector.broadcast %106 : vector<8x1xf32> to vector<8x32xf32>
    %115 = arith.subf %100, %114 : vector<8x32xf32>
    %cst_41 = arith.constant 9.99999974E-6 : f32
    %116 = vector.broadcast %cst_41 : f32 to vector<8x1xf32>
    %117 = arith.addf %113, %116 : vector<8x1xf32>
    %118 = math.rsqrt %117 : vector<8x1xf32>
    %119 = vector.broadcast %118 : vector<8x1xf32> to vector<8x32xf32>
    %120 = arith.mulf %115, %119 : vector<8x32xf32>
    %121 = vector.broadcast %101 : vector<1x32xf32> to vector<8x32xf32>
    %122 = arith.mulf %120, %121 : vector<8x32xf32>
    %123 = vector.broadcast %102 : vector<1x32xf32> to vector<8x32xf32>
    %124 = arith.addf %122, %123 : vector<8x32xf32>
    %125 = arith.truncf %124 : vector<8x32xf32> to vector<8x32xbf16>
    %c0_42 = arith.constant 0 : index
    %c0_43 = arith.constant 0 : index
    %126 = vector.load %arg8[%c0_42, %c0_43] : memref<32x64xbf16, #tpu.memory_space<vmem>>, vector<32x64xbf16>
    %cst_44 = arith.constant dense<0.000000e+00> : vector<8x64xf32>
    %127 = tpu.matmul %125, %126, %cst_44 {dimension_numbers = #tpu.dot_dimension_numbers<[1], [0], [0], [1], [0, 0, 1, 1], [], []>} : vector<8x32xbf16>, vector<32x64xbf16>, vector<8x64xf32> -> vector<8x64xf32>
    %c0_45 = arith.constant 0 : index
    %c0_46 = arith.constant 0 : index
    %128 = vector.load %arg4[%c0_45, %c0_46] : memref<1x64xf32, #tpu.memory_space<vmem>>, vector<1x64xf32>
    %129 = vector.broadcast %128 : vector<1x64xf32> to vector<8x64xf32>
    %130 = arith.addf %127, %129 : vector<8x64xf32>
    %cst_47 = arith.constant 0.000000e+00 : f32
    %131 = vector.broadcast %cst_47 : f32 to vector<8x64xf32>
    %132 = arith.maximumf %130, %131 : vector<8x64xf32>
    %133 = arith.truncf %132 : vector<8x64xf32> to vector<8x64xbf16>
    %c0_48 = arith.constant 0 : index
    %c0_49 = arith.constant 0 : index
    %134 = vector.load %arg9[%c0_48, %c0_49] : memref<64x32xbf16, #tpu.memory_space<vmem>>, vector<64x32xbf16>
    %cst_50 = arith.constant dense<0.000000e+00> : vector<8x32xf32>
    %135 = tpu.matmul %133, %134, %cst_50 {dimension_numbers = #tpu.dot_dimension_numbers<[1], [0], [0], [1], [0, 0, 1, 1], [], []>} : vector<8x64xbf16>, vector<64x32xbf16>, vector<8x32xf32> -> vector<8x32xf32>
    %c7 = arith.constant 7 : index
    %c0_51 = arith.constant 0 : index
    %136 = vector.load %arg3[%c7, %c0_51] : memref<10x32xf32, #tpu.memory_space<vmem>>, vector<1x32xf32>
    %137 = vector.broadcast %136 : vector<1x32xf32> to vector<8x32xf32>
    %138 = arith.addf %135, %137 : vector<8x32xf32>
    %139 = arith.addf %124, %138 : vector<8x32xf32>
    %c8 = arith.constant 8 : index
    %c0_52 = arith.constant 0 : index
    %140 = vector.load %arg3[%c8, %c0_52] : memref<10x32xf32, #tpu.memory_space<vmem>>, vector<1x32xf32>
    %c9 = arith.constant 9 : index
    %c0_53 = arith.constant 0 : index
    %141 = vector.load %arg3[%c9, %c0_53] : memref<10x32xf32, #tpu.memory_space<vmem>>, vector<1x32xf32>
    %cst_54 = arith.constant dense<0.000000e+00> : vector<8xf32>
    %142 = vector.multi_reduction <add>, %139, %cst_54 [1] : vector<8x32xf32> to vector<8xf32>
    %143 = vector.shape_cast %142 : vector<8xf32> to vector<8x1xf32>
    %cst_55 = arith.constant 3.200000e+01 : f32
    %144 = vector.broadcast %cst_55 : f32 to vector<8x1xf32>
    %145 = arith.divf %143, %144 : vector<8x1xf32>
    %146 = vector.broadcast %145 : vector<8x1xf32> to vector<8x32xf32>
    %147 = arith.subf %139, %146 : vector<8x32xf32>
    %148 = arith.mulf %147, %147 : vector<8x32xf32>
    %cst_56 = arith.constant dense<0.000000e+00> : vector<8xf32>
    %149 = vector.multi_reduction <add>, %148, %cst_56 [1] : vector<8x32xf32> to vector<8xf32>
    %150 = vector.shape_cast %149 : vector<8xf32> to vector<8x1xf32>
    %cst_57 = arith.constant 3.200000e+01 : f32
    %151 = vector.broadcast %cst_57 : f32 to vector<8x1xf32>
    %152 = arith.divf %150, %151 : vector<8x1xf32>
    %153 = vector.broadcast %145 : vector<8x1xf32> to vector<8x32xf32>
    %154 = arith.subf %139, %153 : vector<8x32xf32>
    %cst_58 = arith.constant 9.99999974E-6 : f32
    %155 = vector.broadcast %cst_58 : f32 to vector<8x1xf32>
    %156 = arith.addf %152, %155 : vector<8x1xf32>
    %157 = math.rsqrt %156 : vector<8x1xf32>
    %158 = vector.broadcast %157 : vector<8x1xf32> to vector<8x32xf32>
    %159 = arith.mulf %154, %158 : vector<8x32xf32>
    %160 = vector.broadcast %140 : vector<1x32xf32> to vector<8x32xf32>
    %161 = arith.mulf %159, %160 : vector<8x32xf32>
    %162 = vector.broadcast %141 : vector<1x32xf32> to vector<8x32xf32>
    %163 = arith.addf %161, %162 : vector<8x32xf32>
    %164 = vector.shape_cast %163 : vector<8x32xf32> to vector<1x8x32xf32>
    %c0_59 = arith.constant 0 : index
    %c0_60 = arith.constant 0 : index
    %c0_61 = arith.constant 0 : index
    %165 = vector.load %arg10[%c0_59, %c0_60, %c0_61] : memref<1x8x32xf32, #tpu.memory_space<vmem>>, vector<1x8x32xf32>
    tpu.vector_store %arg10[%c0_59, %c0_60, %c0_61], %164 {strides = array<i32>} : memref<1x8x32xf32, #tpu.memory_space<vmem>>, vector<1x8x32xf32>,
    return
  }
  func.func @transform_0(%arg0: i32) -> (i32, i32, i32) {
    %c0_i32 = arith.constant 0 : i32
    %c0_i32_0 = arith.constant 0 : i32
    %c0_i32_1 = arith.constant 0 : i32
    return %arg0, %c0_i32, %c0_i32_0 : i32, i32, i32
  }
  func.func @transform_1(%arg0: i32) -> (i32, i32) {
    %c0_i32 = arith.constant 0 : i32
    %c0_i32_0 = arith.constant 0 : i32
    %c0_i32_1 = arith.constant 0 : i32
    return %c0_i32, %c0_i32_0 : i32, i32
  }
  func.func @transform_2(%arg0: i32) -> (i32, i32) {
    %c0_i32 = arith.constant 0 : i32
    %c0_i32_0 = arith.constant 0 : i32
    %c0_i32_1 = arith.constant 0 : i32
    return %c0_i32, %c0_i32_0 : i32, i32
  }
  func.func @transform_3(%arg0: i32) -> (i32, i32) {
    %c0_i32 = arith.constant 0 : i32
    %c0_i32_0 = arith.constant 0 : i32
    %c0_i32_1 = arith.constant 0 : i32
    return %c0_i32, %c0_i32_0 : i32, i32
  }
  func.func @transform_4(%arg0: i32) -> (i32, i32) {
    %c0_i32 = arith.constant 0 : i32
    %c0_i32_0 = arith.constant 0 : i32
    %c0_i32_1 = arith.constant 0 : i32
    return %c0_i32, %c0_i32_0 : i32, i32
  }
  func.func @transform_5(%arg0: i32) -> (i32, i32) {
    %c0_i32 = arith.constant 0 : i32
    %c0_i32_0 = arith.constant 0 : i32
    %c0_i32_1 = arith.constant 0 : i32
    return %c0_i32, %c0_i32_0 : i32, i32
  }
  func.func @transform_6(%arg0: i32) -> (i32, i32) {
    %c0_i32 = arith.constant 0 : i32
    %c0_i32_0 = arith.constant 0 : i32
    %c0_i32_1 = arith.constant 0 : i32
    return %c0_i32, %c0_i32_0 : i32, i32
  }
  func.func @transform_7(%arg0: i32) -> (i32, i32) {
    %c0_i32 = arith.constant 0 : i32
    %c0_i32_0 = arith.constant 0 : i32
    %c0_i32_1 = arith.constant 0 : i32
    return %c0_i32, %c0_i32_0 : i32, i32
  }
  func.func @transform_8(%arg0: i32) -> (i32, i32) {
    %c0_i32 = arith.constant 0 : i32
    %c0_i32_0 = arith.constant 0 : i32
    %c0_i32_1 = arith.constant 0 : i32
    return %c0_i32, %c0_i32_0 : i32, i32
  }
  func.func @transform_9(%arg0: i32) -> (i32, i32, i32) {
    %c0_i32 = arith.constant 0 : i32
    %c0_i32_0 = arith.constant 0 : i32
    %c0_i32_1 = arith.constant 0 : i32
    return %arg0, %c0_i32, %c0_i32_0 : i32, i32, i32
  }
}

module attributes {stable_mosaic.version = 11 : i64} {
  func.func @kernel(%arg0: i32, %arg1: memref<1x8x64xbf16, #tpu.memory_space<vmem>>, %arg2: memref<8x32xf32, #tpu.memory_space<vmem>>, %arg3: memref<10x32xf32, #tpu.memory_space<vmem>>, %arg4: memref<1x64xf32, #tpu.memory_space<vmem>>, %arg5: memref<64x32xbf16, #tpu.memory_space<vmem>>, %arg6: memref<32x96xbf16, #tpu.memory_space<vmem>>, %arg7: memref<32x32xbf16, #tpu.memory_space<vmem>>, %arg8: memref<32x64xbf16, #tpu.memory_space<vmem>>, %arg9: memref<64x32xbf16, #tpu.memory_space<vmem>>, %arg10: memref<1x8x32xf32, #tpu.memory_space<vmem>>) attributes {dimension_semantics = [#tpu.dimension_semantics<parallel>], iteration_bounds = array<i64: 2>, scalar_prefetch = 0 : i64, scratch_operands = 0 : i64, tpu.core_type = #tpu.core_type<tc>, window_params = [{transform_indices = @transform_0, window_bounds = array<i64: 1, 8, 64>}, {pipeline_mode = #tpu.pipeline_mode<synchronous>, transform_indices = @transform_1, window_bounds = array<i64: 8, 32>}, {pipeline_mode = #tpu.pipeline_mode<synchronous>, transform_indices = @transform_2, window_bounds = array<i64: 10, 32>}, {pipeline_mode = #tpu.pipeline_mode<synchronous>, transform_indices = @transform_3, window_bounds = array<i64: 1, 64>}, {pipeline_mode = #tpu.pipeline_mode<synchronous>, transform_indices = @transform_4, window_bounds = array<i64: 64, 32>}, {pipeline_mode = #tpu.pipeline_mode<synchronous>, transform_indices = @transform_5, window_bounds = array<i64: 32, 96>}, {pipeline_mode = #tpu.pipeline_mode<synchronous>, transform_indices = @transform_6, window_bounds = array<i64: 32, 32>}, {pipeline_mode = #tpu.pipeline_mode<synchronous>, transform_indices = @transform_7, window_bounds = array<i64: 32, 64>}, {pipeline_mode = #tpu.pipeline_mode<synchronous>, transform_indices = @transform_8, window_bounds = array<i64: 64, 32>}, {transform_indices = @transform_9, window_bounds = array<i64: 1, 8, 32>}]} {
    %c0 = arith.constant 0 : index
    %c0_0 = arith.constant 0 : index
    %c0_1 = arith.constant 0 : index
    %0 = vector.load %arg1[%c0, %c0_0, %c0_1] : memref<1x8x64xbf16, #tpu.memory_space<vmem>>, vector<1x8x64xbf16>
    %1 = vector.shape_cast %0 : vector<1x8x64xbf16> to vector<8x64xbf16>
    %c0_2 = arith.constant 0 : index
    %c0_3 = arith.constant 0 : index
    %2 = vector.load %arg5[%c0_2, %c0_3] : memref<64x32xbf16, #tpu.memory_space<vmem>>, vector<64x32xbf16>
    %cst = arith.constant dense<0.000000e+00> : vector<8x32xf32>
    %3 = tpu.matmul %1, %2, %cst {dimension_numbers = #tpu.dot_dimension_numbers<[1], [0], [0], [1], [0, 0, 1, 1], [], []>} : vector<8x64xbf16>, vector<64x32xbf16>, vector<8x32xf32> -> vector<8x32xf32>
    %c0_4 = arith.constant 0 : index
    %c0_5 = arith.constant 0 : index
    %4 = vector.load %arg3[%c0_4, %c0_5] : memref<10x32xf32, #tpu.memory_space<vmem>>, vector<1x32xf32>
    %5 = vector.broadcast %4 : vector<1x32xf32> to vector<8x32xf32>
    %6 = arith.addf %3, %5 : vector<8x32xf32>
    %7 = vector.shape_cast %6 : vector<8x32xf32> to vector<1x8x32xf32>
    %c0_6 = arith.constant 0 : index
    %c0_7 = arith.constant 0 : index
    %8 = vector.load %arg2[%c0_6, %c0_7] : memref<8x32xf32, #tpu.memory_space<vmem>>, vector<8x32xf32>
    %9 = vector.shape_cast %8 : vector<8x32xf32> to vector<1x8x32xf32>
    %10 = arith.addf %7, %9 : vector<1x8x32xf32>
    %11 = vector.shape_cast %10 : vector<1x8x32xf32> to vector<8x32xf32>
    %12 = arith.truncf %11 : vector<8x32xf32> to vector<8x32xbf16>
    %c0_8 = arith.constant 0 : index
    %c0_9 = arith.constant 0 : index
    %13 = vector.load %arg6[%c0_8, %c0_9] : memref<32x96xbf16, #tpu.memory_space<vmem>>, vector<32x96xbf16>
    %cst_10 = arith.constant dense<0.000000e+00> : vector<8x96xf32>
    %14 = tpu.matmul %12, %13, %cst_10 {dimension_numbers = #tpu.dot_dimension_numbers<[1], [0], [0], [1], [0, 0, 1, 1], [], []>} : vector<8x32xbf16>, vector<32x96xbf16>, vector<8x96xf32> -> vector<8x96xf32>
    %15 = vector.extract_strided_slice %14 {offsets = [0, 0], sizes = [8, 32], strides = [1, 1]} : vector<8x96xf32> to vector<8x32xf32>
    %c1 = arith.constant 1 : index
    %c0_11 = arith.constant 0 : index
    %16 = vector.load %arg3[%c1, %c0_11] : memref<10x32xf32, #tpu.memory_space<vmem>>, vector<1x32xf32>
    %17 = vector.broadcast %16 : vector<1x32xf32> to vector<8x32xf32>
    %18 = arith.addf %15, %17 : vector<8x32xf32>
    %cst_12 = arith.constant 0.353553385 : f32
    %19 = vector.broadcast %cst_12 : f32 to vector<8x32xf32>
    %20 = arith.mulf %18, %19 : vector<8x32xf32>
    %21 = vector.shape_cast %20 : vector<8x32xf32> to vector<1x8x32xf32>
    %22 = vector.extract_strided_slice %14 {offsets = [0, 32], sizes = [8, 32], strides = [1, 1]} : vector<8x96xf32> to vector<8x32xf32>
    %c2 = arith.constant 2 : index
    %c0_13 = arith.constant 0 : index
    %23 = vector.load %arg3[%c2, %c0_13] : memref<10x32xf32, #tpu.memory_space<vmem>>, vector<1x32xf32>
    %24 = vector.broadcast %23 : vector<1x32xf32> to vector<8x32xf32>
    %25 = arith.addf %22, %24 : vector<8x32xf32>
    %26 = vector.shape_cast %25 : vector<8x32xf32> to vector<1x8x32xf32>
    %27 = vector.extract_strided_slice %14 {offsets = [0, 64], sizes = [8, 32], strides = [1, 1]} : vector<8x96xf32> to vector<8x32xf32>
    %c3 = arith.constant 3 : index
    %c0_14 = arith.constant 0 : index
    %28 = vector.load %arg3[%c3, %c0_14] : memref<10x32xf32, #tpu.memory_space<vmem>>, vector<1x32xf32>
    %29 = vector.broadcast %28 : vector<1x32xf32> to vector<8x32xf32>
    %30 = arith.addf %27, %29 : vector<8x32xf32>
    %31 = vector.shape_cast %30 : vector<8x32xf32> to vector<1x8x32xf32>
    %32 = vector.extract_strided_slice %21 {offsets = [0, 0, 0], sizes = [1, 8, 8], strides = [1, 1, 1]} : vector<1x8x32xf32> to vector<1x8x8xf32>
    %33 = vector.extract_strided_slice %26 {offsets = [0, 0, 0], sizes = [1, 8, 8], strides = [1, 1, 1]} : vector<1x8x32xf32> to vector<1x8x8xf32>
    "tpu.trace_start"() <{level = 10 : i32, message = "bqd,bkd->bqk"}> : () -> ()
    %cst_15 = arith.constant dense<0.000000e+00> : vector<1x8x8xf32>
    %34 = tpu.matmul %32, %33, %cst_15 {dimension_numbers = #tpu.dot_dimension_numbers<[2], [2], [1], [1], [0, 0, 0, 1, 1, 1], [0], [0]>} : vector<1x8x8xf32>, vector<1x8x8xf32>, vector<1x8x8xf32> -> vector<1x8x8xf32>
    "tpu.trace_stop"() : () -> ()
    %cst_16 = arith.constant dense<0xFF800000> : vector<1x8xf32>
    %35 = vector.multi_reduction <maximumf>, %34, %cst_16 [2] : vector<1x8x8xf32> to vector<1x8xf32>
    %36 = vector.shape_cast %35 : vector<1x8xf32> to vector<1x8x1xf32>
    %37 = vector.broadcast %36 : vector<1x8x1xf32> to vector<1x8x8xf32>
    %38 = arith.subf %34, %37 : vector<1x8x8xf32>
    %39 = math.exp %38 : vector<1x8x8xf32>
    %cst_17 = arith.constant dense<0.000000e+00> : vector<1x8xf32>
    %40 = vector.multi_reduction <add>, %39, %cst_17 [2] : vector<1x8x8xf32> to vector<1x8xf32>
    %41 = vector.shape_cast %40 : vector<1x8xf32> to vector<1x8x1xf32>
    %42 = tpu.reciprocal %41 {approx = true} : vector<1x8x1xf32> -> vector<1x8x1xf32>
    %43 = vector.broadcast %42 : vector<1x8x1xf32> to vector<1x8x8xf32>
    %44 = arith.mulf %39, %43 : vector<1x8x8xf32>
    %45 = vector.extract_strided_slice %31 {offsets = [0, 0, 0], sizes = [1, 8, 8], strides = [1, 1, 1]} : vector<1x8x32xf32> to vector<1x8x8xf32>
    "tpu.trace_start"() <{level = 10 : i32, message = "bqk,bkd->bqd"}> : () -> ()
    %cst_18 = arith.constant dense<0.000000e+00> : vector<1x8x8xf32>
    %46 = tpu.matmul %44, %45, %cst_18 {dimension_numbers = #tpu.dot_dimension_numbers<[2], [1], [1], [2], [0, 0, 0, 1, 1, 2], [0], [0]>} : vector<1x8x8xf32>, vector<1x8x8xf32>, vector<1x8x8xf32> -> vector<1x8x8xf32>
    "tpu.trace_stop"() : () -> ()
    %47 = vector.extract_strided_slice %21 {offsets = [0, 0, 8], sizes = [1, 8, 8], strides = [1, 1, 1]} : vector<1x8x32xf32> to vector<1x8x8xf32>
    %48 = vector.extract_strided_slice %26 {offsets = [0, 0, 8], sizes = [1, 8, 8], strides = [1, 1, 1]} : vector<1x8x32xf32> to vector<1x8x8xf32>
    "tpu.trace_start"() <{level = 10 : i32, message = "bqd,bkd->bqk"}> : () -> ()
    %cst_19 = arith.constant dense<0.000000e+00> : vector<1x8x8xf32>
    %49 = tpu.matmul %47, %48, %cst_19 {dimension_numbers = #tpu.dot_dimension_numbers<[2], [2], [1], [1], [0, 0, 0, 1, 1, 1], [0], [0]>} : vector<1x8x8xf32>, vector<1x8x8xf32>, vector<1x8x8xf32> -> vector<1x8x8xf32>
    "tpu.trace_stop"() : () -> ()
    %cst_20 = arith.constant dense<0xFF800000> : vector<1x8xf32>
    %50 = vector.multi_reduction <maximumf>, %49, %cst_20 [2] : vector<1x8x8xf32> to vector<1x8xf32>
    %51 = vector.shape_cast %50 : vector<1x8xf32> to vector<1x8x1xf32>
    %52 = vector.broadcast %51 : vector<1x8x1xf32> to vector<1x8x8xf32>
    %53 = arith.subf %49, %52 : vector<1x8x8xf32>
    %54 = math.exp %53 : vector<1x8x8xf32>
    %cst_21 = arith.constant dense<0.000000e+00> : vector<1x8xf32>
    %55 = vector.multi_reduction <add>, %54, %cst_21 [2] : vector<1x8x8xf32> to vector<1x8xf32>
    %56 = vector.shape_cast %55 : vector<1x8xf32> to vector<1x8x1xf32>
    %57 = tpu.reciprocal %56 {approx = true} : vector<1x8x1xf32> -> vector<1x8x1xf32>
    %58 = vector.broadcast %57 : vector<1x8x1xf32> to vector<1x8x8xf32>
    %59 = arith.mulf %54, %58 : vector<1x8x8xf32>
    %60 = vector.extract_strided_slice %31 {offsets = [0, 0, 8], sizes = [1, 8, 8], strides = [1, 1, 1]} : vector<1x8x32xf32> to vector<1x8x8xf32>
    "tpu.trace_start"() <{level = 10 : i32, message = "bqk,bkd->bqd"}> : () -> ()
    %cst_22 = arith.constant dense<0.000000e+00> : vector<1x8x8xf32>
    %61 = tpu.matmul %59, %60, %cst_22 {dimension_numbers = #tpu.dot_dimension_numbers<[2], [1], [1], [2], [0, 0, 0, 1, 1, 2], [0], [0]>} : vector<1x8x8xf32>, vector<1x8x8xf32>, vector<1x8x8xf32> -> vector<1x8x8xf32>
    "tpu.trace_stop"() : () -> ()
    %62 = vector.extract_strided_slice %21 {offsets = [0, 0, 16], sizes = [1, 8, 8], strides = [1, 1, 1]} : vector<1x8x32xf32> to vector<1x8x8xf32>
    %63 = vector.extract_strided_slice %26 {offsets = [0, 0, 16], sizes = [1, 8, 8], strides = [1, 1, 1]} : vector<1x8x32xf32> to vector<1x8x8xf32>
    "tpu.trace_start"() <{level = 10 : i32, message = "bqd,bkd->bqk"}> : () -> ()
    %cst_23 = arith.constant dense<0.000000e+00> : vector<1x8x8xf32>
    %64 = tpu.matmul %62, %63, %cst_23 {dimension_numbers = #tpu.dot_dimension_numbers<[2], [2], [1], [1], [0, 0, 0, 1, 1, 1], [0], [0]>} : vector<1x8x8xf32>, vector<1x8x8xf32>, vector<1x8x8xf32> -> vector<1x8x8xf32>
    "tpu.trace_stop"() : () -> ()
    %cst_24 = arith.constant dense<0xFF800000> : vector<1x8xf32>
    %65 = vector.multi_reduction <maximumf>, %64, %cst_24 [2] : vector<1x8x8xf32> to vector<1x8xf32>
    %66 = vector.shape_cast %65 : vector<1x8xf32> to vector<1x8x1xf32>
    %67 = vector.broadcast %66 : vector<1x8x1xf32> to vector<1x8x8xf32>
    %68 = arith.subf %64, %67 : vector<1x8x8xf32>
    %69 = math.exp %68 : vector<1x8x8xf32>
    %cst_25 = arith.constant dense<0.000000e+00> : vector<1x8xf32>
    %70 = vector.multi_reduction <add>, %69, %cst_25 [2] : vector<1x8x8xf32> to vector<1x8xf32>
    %71 = vector.shape_cast %70 : vector<1x8xf32> to vector<1x8x1xf32>
    %72 = tpu.reciprocal %71 {approx = true} : vector<1x8x1xf32> -> vector<1x8x1xf32>
    %73 = vector.broadcast %72 : vector<1x8x1xf32> to vector<1x8x8xf32>
    %74 = arith.mulf %69, %73 : vector<1x8x8xf32>
    %75 = vector.extract_strided_slice %31 {offsets = [0, 0, 16], sizes = [1, 8, 8], strides = [1, 1, 1]} : vector<1x8x32xf32> to vector<1x8x8xf32>
    "tpu.trace_start"() <{level = 10 : i32, message = "bqk,bkd->bqd"}> : () -> ()
    %cst_26 = arith.constant dense<0.000000e+00> : vector<1x8x8xf32>
    %76 = tpu.matmul %74, %75, %cst_26 {dimension_numbers = #tpu.dot_dimension_numbers<[2], [1], [1], [2], [0, 0, 0, 1, 1, 2], [0], [0]>} : vector<1x8x8xf32>, vector<1x8x8xf32>, vector<1x8x8xf32> -> vector<1x8x8xf32>
    "tpu.trace_stop"() : () -> ()
    %77 = vector.extract_strided_slice %21 {offsets = [0, 0, 24], sizes = [1, 8, 8], strides = [1, 1, 1]} : vector<1x8x32xf32> to vector<1x8x8xf32>
    %78 = vector.extract_strided_slice %26 {offsets = [0, 0, 24], sizes = [1, 8, 8], strides = [1, 1, 1]} : vector<1x8x32xf32> to vector<1x8x8xf32>
    "tpu.trace_start"() <{level = 10 : i32, message = "bqd,bkd->bqk"}> : () -> ()
    %cst_27 = arith.constant dense<0.000000e+00> : vector<1x8x8xf32>
    %79 = tpu.matmul %77, %78, %cst_27 {dimension_numbers = #tpu.dot_dimension_numbers<[2], [2], [1], [1], [0, 0, 0, 1, 1, 1], [0], [0]>} : vector<1x8x8xf32>, vector<1x8x8xf32>, vector<1x8x8xf32> -> vector<1x8x8xf32>
    "tpu.trace_stop"() : () -> ()
    %cst_28 = arith.constant dense<0xFF800000> : vector<1x8xf32>
    %80 = vector.multi_reduction <maximumf>, %79, %cst_28 [2] : vector<1x8x8xf32> to vector<1x8xf32>
    %81 = vector.shape_cast %80 : vector<1x8xf32> to vector<1x8x1xf32>
    %82 = vector.broadcast %81 : vector<1x8x1xf32> to vector<1x8x8xf32>
    %83 = arith.subf %79, %82 : vector<1x8x8xf32>
    %84 = math.exp %83 : vector<1x8x8xf32>
    %cst_29 = arith.constant dense<0.000000e+00> : vector<1x8xf32>
    %85 = vector.multi_reduction <add>, %84, %cst_29 [2] : vector<1x8x8xf32> to vector<1x8xf32>
    %86 = vector.shape_cast %85 : vector<1x8xf32> to vector<1x8x1xf32>
    %87 = tpu.reciprocal %86 {approx = true} : vector<1x8x1xf32> -> vector<1x8x1xf32>
    %88 = vector.broadcast %87 : vector<1x8x1xf32> to vector<1x8x8xf32>
    %89 = arith.mulf %84, %88 : vector<1x8x8xf32>
    %90 = vector.extract_strided_slice %31 {offsets = [0, 0, 24], sizes = [1, 8, 8], strides = [1, 1, 1]} : vector<1x8x32xf32> to vector<1x8x8xf32>
    "tpu.trace_start"() <{level = 10 : i32, message = "bqk,bkd->bqd"}> : () -> ()
    %cst_30 = arith.constant dense<0.000000e+00> : vector<1x8x8xf32>
    %91 = tpu.matmul %89, %90, %cst_30 {dimension_numbers = #tpu.dot_dimension_numbers<[2], [1], [1], [2], [0, 0, 0, 1, 1, 2], [0], [0]>} : vector<1x8x8xf32>, vector<1x8x8xf32>, vector<1x8x8xf32> -> vector<1x8x8xf32>
    "tpu.trace_stop"() : () -> ()
    %92 = tpu.concatenate %46, %61, %76, %91 in 2 : vector<1x8x8xf32>, vector<1x8x8xf32>, vector<1x8x8xf32>, vector<1x8x8xf32> -> vector<1x8x32xf32>
    %93 = vector.shape_cast %92 : vector<1x8x32xf32> to vector<8x32xf32>
    %94 = arith.truncf %93 : vector<8x32xf32> to vector<8x32xbf16>
    %c0_31 = arith.constant 0 : index
    %c0_32 = arith.constant 0 : index
    %95 = vector.load %arg7[%c0_31, %c0_32] : memref<32x32xbf16, #tpu.memory_space<vmem>>, vector<32x32xbf16>
    %cst_33 = arith.constant dense<0.000000e+00> : vector<8x32xf32>
    %96 = tpu.matmul %94, %95, %cst_33 {dimension_numbers = #tpu.dot_dimension_numbers<[1], [0], [0], [1], [0, 0, 1, 1], [], []>} : vector<8x32xbf16>, vector<32x32xbf16>, vector<8x32xf32> -> vector<8x32xf32>
    %c4 = arith.constant 4 : index
    %c0_34 = arith.constant 0 : index
    %97 = vector.load %arg3[%c4, %c0_34] : memref<10x32xf32, #tpu.memory_space<vmem>>, vector<1x32xf32>
    %98 = vector.broadcast %97 : vector<1x32xf32> to vector<8x32xf32>
    %99 = arith.addf %96, %98 : vector<8x32xf32>
    %100 = arith.addf %11, %99 : vector<8x32xf32>
    %c5 = arith.constant 5 : index
    %c0_35 = arith.constant 0 : index
    %101 = vector.load %arg3[%c5, %c0_35] : memref<10x32xf32, #tpu.memory_space<vmem>>, vector<1x32xf32>
    %c6 = arith.constant 6 : index
    %c0_36 = arith.constant 0 : index
    %102 = vector.load %arg3[%c6, %c0_36] : memref<10x32xf32, #tpu.memory_space<vmem>>, vector<1x32xf32>
    %cst_37 = arith.constant dense<0.000000e+00> : vector<8xf32>
    %103 = vector.multi_reduction <add>, %100, %cst_37 [1] : vector<8x32xf32> to vector<8xf32>
    %104 = vector.shape_cast %103 : vector<8xf32> to vector<8x1xf32>
    %cst_38 = arith.constant 3.200000e+01 : f32
    %105 = vector.broadcast %cst_38 : f32 to vector<8x1xf32>
    %106 = arith.divf %104, %105 : vector<8x1xf32>
    %107 = vector.broadcast %106 : vector<8x1xf32> to vector<8x32xf32>
    %108 = arith.subf %100, %107 : vector<8x32xf32>
    %109 = arith.mulf %108, %108 : vector<8x32xf32>
    %cst_39 = arith.constant dense<0.000000e+00> : vector<8xf32>
    %110 = vector.multi_reduction <add>, %109, %cst_39 [1] : vector<8x32xf32> to vector<8xf32>
    %111 = vector.shape_cast %110 : vector<8xf32> to vector<8x1xf32>
    %cst_40 = arith.constant 3.200000e+01 : f32
    %112 = vector.broadcast %cst_40 : f32 to vector<8x1xf32>
    %113 = arith.divf %111, %112 : vector<8x1xf32>
    %114 = vector.broadcast %106 : vector<8x1xf32> to vector<8x32xf32>
    %115 = arith.subf %100, %114 : vector<8x32xf32>
    %cst_41 = arith.constant 9.99999974E-6 : f32
    %116 = vector.broadcast %cst_41 : f32 to vector<8x1xf32>
    %117 = arith.addf %113, %116 : vector<8x1xf32>
    %118 = math.rsqrt %117 : vector<8x1xf32>
    %119 = vector.broadcast %118 : vector<8x1xf32> to vector<8x32xf32>
    %120 = arith.mulf %115, %119 : vector<8x32xf32>
    %121 = vector.broadcast %101 : vector<1x32xf32> to vector<8x32xf32>
    %122 = arith.mulf %120, %121 : vector<8x32xf32>
    %123 = vector.broadcast %102 : vector<1x32xf32> to vector<8x32xf32>
    %124 = arith.addf %122, %123 : vector<8x32xf32>
    %125 = arith.truncf %124 : vector<8x32xf32> to vector<8x32xbf16>
    %c0_42 = arith.constant 0 : index
    %c0_43 = arith.constant 0 : index
    %126 = vector.load %arg8[%c0_42, %c0_43] : memref<32x64xbf16, #tpu.memory_space<vmem>>, vector<32x64xbf16>
    %cst_44 = arith.constant dense<0.000000e+00> : vector<8x64xf32>
    %127 = tpu.matmul %125, %126, %cst_44 {dimension_numbers = #tpu.dot_dimension_numbers<[1], [0], [0], [1], [0, 0, 1, 1], [], []>} : vector<8x32xbf16>, vector<32x64xbf16>, vector<8x64xf32> -> vector<8x64xf32>
    %c0_45 = arith.constant 0 : index
    %c0_46 = arith.constant 0 : index
    %128 = vector.load %arg4[%c0_45, %c0_46] : memref<1x64xf32, #tpu.memory_space<vmem>>, vector<1x64xf32>
    %129 = vector.broadcast %128 : vector<1x64xf32> to vector<8x64xf32>
    %130 = arith.addf %127, %129 : vector<8x64xf32>
    %cst_47 = arith.constant 0.000000e+00 : f32
    %131 = vector.broadcast %cst_47 : f32 to vector<8x64xf32>
    %132 = arith.maximumf %130, %131 : vector<8x64xf32>
    %133 = arith.truncf %132 : vector<8x64xf32> to vector<8x64xbf16>
    %c0_48 = arith.constant 0 : index
    %c0_49 = arith.constant 0 : index
    %134 = vector.load %arg9[%c0_48, %c0_49] : memref<64x32xbf16, #tpu.memory_space<vmem>>, vector<64x32xbf16>
    %cst_50 = arith.constant dense<0.000000e+00> : vector<8x32xf32>
    %135 = tpu.matmul %133, %134, %cst_50 {dimension_numbers = #tpu.dot_dimension_numbers<[1], [0], [0], [1], [0, 0, 1, 1], [], []>} : vector<8x64xbf16>, vector<64x32xbf16>, vector<8x32xf32> -> vector<8x32xf32>
    %c7 = arith.constant 7 : index
    %c0_51 = arith.constant 0 : index
    %136 = vector.load %arg3[%c7, %c0_51] : memref<10x32xf32, #tpu.memory_space<vmem>>, vector<1x32xf32>
    %137 = vector.broadcast %136 : vector<1x32xf32> to vector<8x32xf32>
    %138 = arith.addf %135, %137 : vector<8x32xf32>
    %139 = arith.addf %124, %138 : vector<8x32xf32>
    %c8 = arith.constant 8 : index
    %c0_52 = arith.constant 0 : index
    %140 = vector.load %arg3[%c8, %c0_52] : memref<10x32xf32, #tpu.memory_space<vmem>>, vector<1x32xf32>
    %c9 = arith.constant 9 : index
    %c0_53 = arith.constant 0 : index
    %141 = vector.load %arg3[%c9, %c0_53] : memref<10x32xf32, #tpu.memory_space<vmem>>, vector<1x32xf32>
    %cst_54 = arith.constant dense<0.000000e+00> : vector<8xf32>
    %142 = vector.multi_reduction <add>, %139, %cst_54 [1] : vector<8x32xf32> to vector<8xf32>
    %143 = vector.shape_cast %142 : vector<8xf32> to vector<8x1xf32>
    %cst_55 = arith.constant 3.200000e+01 : f32
    %144 = vector.broadcast %cst_55 : f32 to vector<8x1xf32>
    %145 = arith.divf %143, %144 : vector<8x1xf32>
    %146 = vector.broadcast %145 : vector<8x1xf32> to vector<8x32xf32>
    %147 = arith.subf %139, %146 : vector<8x32xf32>
    %148 = arith.mulf %147, %147 : vector<8x32xf32>
    %cst_56 = arith.constant dense<0.000000e+00> : vector<8xf32>
    %149 = vector.multi_reduction <add>, %148, %cst_56 [1] : vector<8x32xf32> to vector<8xf32>
    %150 = vector.shape_cast %149 : vector<8xf32> to vector<8x1xf32>
    %cst_57 = arith.constant 3.200000e+01 : f32
    %151 = vector.broadcast %cst_57 : f32 to vector<8x1xf32>
    %152 = arith.divf %150, %151 : vector<8x1xf32>
    %153 = vector.broadcast %145 : vector<8x1xf32> to vector<8x32xf32>
    %154 = arith.subf %139, %153 : vector<8x32xf32>
    %cst_58 = arith.constant 9.99999974E-6 : f32
    %155 = vector.broadcast %cst_58 : f32 to vector<8x1xf32>
    %156 = arith.addf %152, %155 : vector<8x1xf32>
    %157 = math.rsqrt %156 : vector<8x1xf32>
    %158 = vector.broadcast %157 : vector<8x1xf32> to vector<8x32xf32>
    %159 = arith.mulf %154, %158 : vector<8x32xf32>
    %160 = vector.broadcast %140 : vector<1x32xf32> to vector<8x32xf32>
    %161 = arith.mulf %159, %160 : vector<8x32xf32>
    %162 = vector.broadcast %141 : vector<1x32xf32> to vector<8x32xf32>
    %163 = arith.addf %161, %162 : vector<8x32xf32>
    %164 = vector.shape_cast %163 : vector<8x32xf32> to vector<1x8x32xf32>
    %c0_59 = arith.constant 0 : index
    %c0_60 = arith.constant 0 : index
    %c0_61 = arith.constant 0 : index
    %165 = vector.load %arg10[%c0_59, %c0_60, %c0_61] : memref<1x8x32xf32, #tpu.memory_space<vmem>>, vector<1x8x32xf32>
    tpu.vector_store %arg10[%c0_59, %c0_60, %c0_61], %164 {strides = array<i32>} : memref<1x8x32xf32, #tpu.memory_space<vmem>>, vector<1x8x32xf32>,
    return
  }
  func.func @transform_0(%arg0: i32) -> (i32, i32, i32) {
    %c0_i32 = arith.constant 0 : i32
    %c0_i32_0 = arith.constant 0 : i32
    %c0_i32_1 = arith.constant 0 : i32
    return %arg0, %c0_i32, %c0_i32_0 : i32, i32, i32
  }
  func.func @transform_1(%arg0: i32) -> (i32, i32) {
    %c0_i32 = arith.constant 0 : i32
    %c0_i32_0 = arith.constant 0 : i32
    %c0_i32_1 = arith.constant 0 : i32
    return %c0_i32, %c0_i32_0 : i32, i32
  }
  func.func @transform_2(%arg0: i32) -> (i32, i32) {
    %c0_i32 = arith.constant 0 : i32
    %c0_i32_0 = arith.constant 0 : i32
    %c0_i32_1 = arith.constant 0 : i32
    return %c0_i32, %c0_i32_0 : i32, i32
  }
  func.func @transform_3(%arg0: i32) -> (i32, i32) {
    %c0_i32 = arith.constant 0 : i32
    %c0_i32_0 = arith.constant 0 : i32
    %c0_i32_1 = arith.constant 0 : i32
    return %c0_i32, %c0_i32_0 : i32, i32
  }
  func.func @transform_4(%arg0: i32) -> (i32, i32) {
    %c0_i32 = arith.constant 0 : i32
    %c0_i32_0 = arith.constant 0 : i32
    %c0_i32_1 = arith.constant 0 : i32
    return %c0_i32, %c0_i32_0 : i32, i32
  }
  func.func @transform_5(%arg0: i32) -> (i32, i32) {
    %c0_i32 = arith.constant 0 : i32
    %c0_i32_0 = arith.constant 0 : i32
    %c0_i32_1 = arith.constant 0 : i32
    return %c0_i32, %c0_i32_0 : i32, i32
  }
  func.func @transform_6(%arg0: i32) -> (i32, i32) {
    %c0_i32 = arith.constant 0 : i32
    %c0_i32_0 = arith.constant 0 : i32
    %c0_i32_1 = arith.constant 0 : i32
    return %c0_i32, %c0_i32_0 : i32, i32
  }
  func.func @transform_7(%arg0: i32) -> (i32, i32) {
    %c0_i32 = arith.constant 0 : i32
    %c0_i32_0 = arith.constant 0 : i32
    %c0_i32_1 = arith.constant 0 : i32
    return %c0_i32, %c0_i32_0 : i32, i32
  }
  func.func @transform_8(%arg0: i32) -> (i32, i32) {
    %c0_i32 = arith.constant 0 : i32
    %c0_i32_0 = arith.constant 0 : i32
    %c0_i32_1 = arith.constant 0 : i32
    return %c0_i32, %c0_i32_0 : i32, i32
  }
  func.func @transform_9(%arg0: i32) -> (i32, i32, i32) {
    %c0_i32 = arith.constant 0 : i32
    %c0_i32_0 = arith.constant 0 : i32
    %c0_i32_1 = arith.constant 0 : i32
    return %arg0, %c0_i32, %c0_i32_0 : i32, i32, i32
  }
}

</mosaic_0001>

<bundles_post_ra>
// kernel: tpu_custom_call.1
= control target key start
LH: loop header
LB: loop body
LE: loop exit
PB: predicated region body
PF: predicated region fallthrough
CT: control target
= control target key end

     0   :  { %14 = vsyncpa [#allocation3], 0  ;;  %s1502_s0 = inlined_call_operand.vmem [shape: bf16[2,8,64], index: 0, kind: input, shape index: {}]   ;;  %s1503_s1 = inlined_call_operand.vmem [shape: f32[8,32], index: 1, kind: input, shape index: {}]   ;;  %s1504_s2 = inlined_call_operand.vmem [shape: f32[10,32], index: 2, kind: input, shape index: {}]   ;;  %s1505_s3 = inlined_call_operand.vmem [shape: f32[1,64], index: 3, kind: input, shape index: {}]   ;;  %s1506_s4 = inlined_call_operand.vmem [shape: bf16[64,32], index: 4, kind: input, shape index: {}]   ;;  %s1507_s5 = inlined_call_operand.vmem [shape: bf16[32,96], index: 5, kind: input, shape index: {}]   ;;  %s1508_s6 = inlined_call_operand.vmem [shape: bf16[32,32], index: 6, kind: input, shape index: {}]   ;;  %s1509_s7 = inlined_call_operand.vmem [shape: bf16[32,64], index: 7, kind: input, shape index: {}]   ;;  %s1510_s8 = inlined_call_operand.vmem [shape: bf16[64,32], index: 8, kind: input, shape index: {}]   ;;  %s1511_s9 = inlined_call_operand.hbm [shape: f32[2,8,32], index: 9, kind: output, shape index: {}]  }
   0x1   :  { %16 = vsyncpa [#allocation3 + $0x1], 0  ;;  %s1294_s30 = smov 0   ;;  %s1296_s10 = smov 0  }
   0x2   :  { %s1298_s11 = smov 0   ;;  %s1300_s12 = smov 0  }
   0x3 LB: > { %s1315_s13 = sadd.s32 4294967295, %s1226_s12   ;;  %s979_s14 = sadd.s32 4294967294, %s1226_s12   ;;  %s1226_s12 = sphi %s1300_s12, %s1517_s12   ;;  %s1222_s11 = sphi %s1298_s11, %s1516_s11   ;;  %s1218_s10 = sphi %s1296_s10, %s1515_s10   ;;  %s1214_s30 = sphi %s1294_s30, %s1514_s30  }
   0x4   : > { %s1319_s15 = sadd.s32 1, %s1226_s12   ;;  %s223_s16 = sadd.s32 1, %s1222_s11 }
   0x5   : > { %s220_s17 = ssub.s32 %s1226_s12, %s1319_s15  ;;  %p233_p0 = scmp.ne.s32.totalorder %s1222_s11, %s1218_s10 }
   0x6   : > { %p221_p1 = scmp.eq.s32.totalorder %s220_s17, 0  ;;  %p234_p2 = scmp.eq.s32.totalorder %s1315_s13, 1 }
   0x7   : > { %p239_p3 = scmp.ne.s32.totalorder %s1218_s10, %s1214_s30  ;;  %p240_p4 = scmp.eq.s32.totalorder %s979_s14, 1 }
   0x8   : > { %s1330_s18 = scalar_select %p221_p1, %s1222_s11, %s223_s16  }
   0x9   : > { %p1332_p5 = por %p234_p2, %p233_p0  ;;  %p1336_p6 = por %p240_p4, %p239_p3 }
   0xa   : > { %p982_p7 = scmp.ge.s32.totalorder %s1226_s12, 1  ;;  %p289_p8 = scmp.lt.s32.totalorder %s1226_s12, 3 }
   0xc   : > { %p290_p9 = pnand %p982_p7, %p289_p8 }
   0xd   : > { %p324_p10 = scmp.lt.s32.totalorder (!%p290_p9), %s1315_s13, 1  ;;  %s1230_s24 = smov (!%p290_p9), 88  }
   0xe   : > { %293 = sbr.rel (%p290_p9) target bundleno = 2464 (0x9a0), region = 56  ;;  %s1232_s26 = smov (!%p290_p9), 80  }
   0xf   : > { %s1233_s27 = smov (!%p290_p9), 104   ;;  %s1234_s14 = smov (!%p290_p9), 64  }
  0x10   : > { %s1235_s16 = smov (!%p290_p9), 72   ;;  %s1236_s17 = smov (!%p290_p9), 112  }
  0x11   : > { %s1238_s22 = smov (!%p290_p9), 48   ;;  %s1239_s23 = smov (!%p290_p9), 40  }
  0x12   : > { %s321_s29 = sand.u32 (!%p290_p9), 1, %s1218_s10  }
  0x13   : > { %v1065_v0 = vld [vmem:[%s1506_s4 + $0x18] sm:$0xff]  ;;  %v1064_v1 = vld [vmem:[%s1506_s4 + $0x10] sm:$0xff]  ;;  %s325_s25 = scalar_select %p324_p10, %s1315_s13, 1  ;;  %v1063_v2 = vld [vmem:[%s1506_s4 + $0x8] sm:$0xff]  ;;  %vm364_vm0 = vcmask 523264   ;;  %vm400_vm1 = vcmask 261120  }
  0x14   : > { %372 = vmatpush.bf16.msra.mxu0 %v1065_v0  ;;  %v1062_v3 = vld [vmem:[%s1506_s4] sm:$0xff]  ;;  %v1067_v5 = vld [vmem:[%s1507_s5 + $0x8] sm:$0xff]  ;;  %vm438_vm2 = vcmask 64512   ;;  %vm710_vm3 = vcmask 130048   ;;  %vm712_vm4 = vcmask 195584  }
  0x15   : > { %s984_s28 = sshll.u32 %s325_s25, 2  ;;  %410 = vmatpush.bf16.msra.mxu1 %v1067_v5  ;;  %v1066_v6 = vld [vmem:[%s1507_s5] sm:$0xff]  ;;  %s1231_s25 = smov 120  }
  0x16   : > { %s327_s21 = scalar_lea.vmem %s1502_s0, %s984_s28  ;;  %v1132_v7 = vld [vmem:[%s1504_s2 + $0x2] ss:$0 sm:$0xff]  ;;  %s1228_s28 = smov 32   ;;  %v1131_v8 = vld [vmem:[%s1504_s2] ss:$0 sm:$0xff] }
  0x17   : > { %v329_v4 = vld [vmem:[%s327_s21] sm:$0xf]  ;;  %424 = vrot.lane.b32.xlu0 %v1132_v7, %s1228_s28  ;;  %s1229_s21 = smov 96  }
  0x18   : > { %373 = vmatpush.bf16.msra.mxu0 %v1064_v1  ;;  %v381_v10 = vld [vmem:[%s1503_s1] sm:$0xff] }
  0x19   : > { %411 = vmatpush.bf16.msra.mxu1 %v1066_v6  ;;  %v1133_v19 = vld [vmem:[%s1504_s2 + $0x1] ss:$0 sm:$0xff]  ;;  %v1134_v25 = vld [vmem:[%s1504_s2 + $0x3] ss:$0 sm:$0xff] }
  0x1c   : > { %374 = vmatpush.bf16.msra.mxu0 %v1063_v2 }
  0x20   : > { %375 = vmatpush.bf16.msra.mxu0 %v1062_v3 }
  0x23   : > { %1001 = vmatmul.msk.bf16.vlgmr.msra.gmra.mxu0 %vm364_vm0, %v329_v4 }
  0x89   : > { %v425_v15 = vpop.permute.xlu0 %424 }
  0xa0   : > { %v377_v9 = vpop.f32.mrf.mxu0 }
  0xa1   : > { %v378_v11 = vadd.f32 %v1131_v8, %v377_v9 }
  0xa3   : > { %v1375_v12 = vadd.f32 %v381_v10, %v378_v11 }
  0xa5   : > { %v383_v13 = vpack.c.bf16 %v1375_v12, %v1375_v12 }
  0xa7   : > { %1010 = vmatmul.msk.bf16.vlgmr.msra.gmra.mxu1 %vm400_vm1, %v383_v13 }
  0xa8   : > { %v379_v14 = vpop.f32.mrf.mxu0 }
 0x124   : > { %v413_v16 = vpop.f32.mrf.mxu1 }
 0x125   : > { %v427_v17 = vadd.f32 %v425_v15, %v413_v16  ;;  %v419_v20 = vadd.f32 %v1133_v19, %v413_v16 }
 0x127   : > { %436 = vrot.lane.b32.xlu0 %v427_v17, %s1229_s21  ;;  %v420_v21 = vmul.f32 0.35355338, %v419_v20  ;;  %s1237_s21 = smov 56  }
 0x12c   : > { %v415_v18 = vpop.f32.mrf.mxu1 }
 0x12d   : > { %v1068_v18 = vld [vmem:[%s1508_s6] sm:$0xff] }
 0x12f   : > { %504 = vrot.lane.b32.xlu0 %v427_v17, %s1230_s24  ;;  %s1240_s24 = smov 8  }
 0x137   : > { %502 = vrot.lane.b32.xlu0 %v420_v21, %s1231_s25  ;;  %s1241_s25 = smov 16  }
 0x13f   : > { %569 = vrot.lane.b32.xlu0 %v427_v17, %s1232_s26  ;;  %s1242_s26 = smov 24  }
 0x147   : > { %632 = vrot.lane.b32.xlu0 %v420_v21, %s1233_s27 }
 0x199   : > { %v437_v22 = vpop.permute.xlu0 %436 }
 0x19a   : > { %1011 = vmatpush.xpose.msk.msra.mxu2 %vm438_vm2, %v437_v22 }
 0x19d   : > { %1012 = vmatmul.msk.f32.vlgmr.msra.gmra.mxu2 %vm438_vm2, %v420_v21 }
 0x1a1   : > { %v505_v34 = vpop.permute.xlu0 %504 }
 0x1a9   : > { %v503_v35 = vpop.permute.xlu0 %502 }
 0x1b1   : > { %v570_v39 = vpop.permute.xlu0 %569 }
 0x1b9   : > { %v633_v42 = vpop.permute.xlu0 %632 }
 0x220   : > { %v461_v23 = vpop.f32.mrf.mxu2 }
 0x221   : > { %v464_v24 = vsel %vm438_vm2, %v461_v23, -inf }
 0x222   : > { %465 = vmax.xlane.f32.xlu1 %v464_v24 }
 0x23b   : > { %431 = vrot.lane.b32.xlu1 %v1134_v25, %s1234_s14 }
 0x243   : > { %634 = vrot.lane.b32.xlu1 %v427_v17, %s1235_s16  ;;  %v1069_v17 = vld [vmem:[%s1508_s6 + $0x8] sm:$0xff]  ;;  %s1059_s16 = sshll.u32 %s1315_s13, 3 }
 0x295   : > { %v466_v26 = vpop.xlane.xlu1 %465 }
 0x296   : > { %v467_v29 = vsub.f32 %v461_v23, %v466_v26  ;;  %v1135_v26 = vld [vmem:[%s1504_s2 + $0x4] ss:$0 sm:$0xff] }
 0x298   : > { %v468_v30 = vmul.f32 1.442695, %v467_v29 }
 0x29a   : > { %1142 = vpow2.f32 %v468_v30 }
 0x2a0   : > { %v1143_v31 = vpop.eup %1142 }
 0x2a1   : > { %v470_v32 = vsel %vm438_vm2, %v1143_v31, 0.0 }
 0x2ad   : > { %v432_v27 = vpop.permute.xlu1 %431 }
 0x2ae   : > { %v1389_v28 = vadd.f32 %v432_v27, %v413_v16 }
 0x2b0   : > { %476 = vrot.lane.b32.xlu2 %v1389_v28, %s1234_s14  ;;  %s983_s14 = sshll.u32 %s321_s29, 3 }
 0x2b1   : > { %s323_s27 = scalar_lea.vmem [#allocation2], %s983_s14  ;;  %s1184_s14 = scalar_lea.hbm %s1511_s9, 16 }
 0x2b2   : > { %s917_s13 = sshll.u32 %s323_s27, 4  ;;  %s918_s13 = int_to_ptr.vmem [resolvable:$true] %s917_s13 }
 0x2b5   : > { %v635_v40 = vpop.permute.xlu1 %634 }
 0x2d9   : > { %471 = vadd.xlane.f32.xlu2 %v470_v32  ;;  %v1243_v32 = vmov 32.0  }
 0x2f1   : > { %567 = vrot.lane.b32.xlu2 %v420_v21, %s1236_s17  ;;  %s905_s17 = scalar_lea.sflag [#allocation3], %s321_s29 }
 0x30a   : > { %v477_v33 = vpop.permute.xlu2 %476 }
 0x30b   : > { %497 = vmatpush.msra.mxu3 %v477_v33 }
 0x30d   : > { %1014 = vmatpush.xpose.msk.msrb.mxu3 %vm438_vm2, %v505_v34 }
 0x34c   : > { %v472_v36 = vpop.xlane.xlu2 %471 }
 0x34d   : > { %1144 = vrcp.f32 %v472_v36 }
 0x353   : > { %v1145_v37 = vpop.eup %1144 }
 0x354   : > { %v474_v38 = vmul.f32 %v1145_v37, %v1143_v31  ;;  %v568_v41 = vpop.permute.xlu2 %567 }
 0x356   : > { %1013 = vmatmul.msk.f32.vlgmr.msra.gmra.mxu3 %vm438_vm2, %v474_v38 }
 0x357   : > { %1017 = vmatpush.xpose.msk.msra.mxu3 %vm438_vm2, %v570_v39 }
 0x35e   : > { %1015 = vmatmul.msk.f32.vlgmr.msrb.gmra.mxu3 %vm438_vm2, %v503_v35 }
 0x35f   : > { %1020 = vmatpush.xpose.msk.msrb.mxu3 %vm438_vm2, %v635_v40 }
 0x366   : > { %1018 = vmatmul.msk.f32.vlgmr.msra.gmra.mxu3 %vm438_vm2, %v568_v41 }
 0x36e   : > { %1021 = vmatmul.msk.f32.vlgmr.msrb.gmra.mxu3 %vm438_vm2, %v633_v42 }
 0x3d9   : > { %v1400_v43 = vpop.f32.mrf.mxu3 }
 0x3e1   : > { %v527_v44 = vpop.f32.mrf.mxu3 }
 0x3e2   : > { %v530_v45 = vsel %vm438_vm2, %v527_v44, -inf }
 0x3e3   : > { %531 = vmax.xlane.f32.xlu2 %v530_v45  ;;  %v1075_v45 = vld [vmem:[%s1510_s8 + $0x18] sm:$0xff] }
 0x3e4   : > { %865 = vmatpush.bf16.msrb.mxu1 %v1075_v45 }
 0x3e9   : > { %v592_v46 = vpop.f32.mrf.mxu3 }
 0x3ea   : > { %v595_v47 = vsel %vm438_vm2, %v592_v46, -inf }
 0x3eb   : > { %596 = vmax.xlane.f32.xlu1 %v595_v47 }
 0x3f1   : > { %v657_v48 = vpop.f32.mrf.mxu3 }
 0x3f2   : > { %v660_v49 = vsel %vm438_vm2, %v657_v48, -inf }
 0x3f3   : > { %661 = vmax.xlane.f32.xlu0 %v660_v49 }
 0x456   : > { %v532_v50 = vpop.xlane.xlu2 %531 }
 0x457   : > { %v533_v51 = vsub.f32 %v527_v44, %v532_v50  ;;  %v1070_v44 = vld [vmem:[%s1509_s7] sm:$0xff] }
 0x459   : > { %v534_v52 = vmul.f32 1.442695, %v533_v51 }
 0x45b   : > { %1146 = vpow2.f32 %v534_v52 }
 0x45e   : > { %v597_v53 = vpop.xlane.xlu1 %596 }
 0x45f   : > { %v598_v54 = vsub.f32 %v592_v46, %v597_v53 }
 0x461   : > { %v1147_v55 = vpop.eup %1146  ;;  %v599_v56 = vmul.f32 1.442695, %v598_v54 }
 0x462   : > { %v536_v57 = vsel %vm438_vm2, %v1147_v55, 0.0 }
 0x463   : > { %1148 = vpow2.f32 %v599_v56  ;;  %537 = vadd.xlane.f32.xlu2 %v536_v57  ;;  %v1136_v56 = vld [vmem:[%s1504_s2 + $0x5] ss:$0 sm:$0xff] }
 0x466   : > { %v662_v58 = vpop.xlane.xlu0 %661 }
 0x467   : > { %v663_v59 = vsub.f32 %v657_v48, %v662_v58  ;;  %v1074_v48 = vld [vmem:[%s1510_s8 + $0x10] sm:$0xff] }
 0x468   : > { %866 = vmatpush.bf16.msrb.mxu1 %v1074_v48 }
 0x469   : > { %v1149_v60 = vpop.eup %1148  ;;  %v664_v61 = vmul.f32 1.442695, %v663_v59  ;;  %v1137_v59 = vld [vmem:[%s1504_s2 + $0x6] ss:$0 sm:$0xff] }
 0x46a   : > { %v601_v62 = vsel %vm438_vm2, %v1149_v60, 0.0 }
 0x46b   : > { %1150 = vpow2.f32 %v664_v61  ;;  %602 = vadd.xlane.f32.xlu1 %v601_v62 }
 0x471   : > { %v1151_v63 = vpop.eup %1150 }
 0x472   : > { %v666_v0 = vsel %vm438_vm2, %v1151_v63, 0.0 }
 0x473   : > { %667 = vadd.xlane.f32.xlu0 %v666_v0  ;;  %v1072_v0 = vld [vmem:[%s1510_s8] sm:$0xff] }
 0x47b   : > { %541 = vrot.lane.b32.xlu2 %v1389_v28, %s1237_s21 }
 0x484   : > { %606 = vrot.lane.b32.xlu1 %v1389_v28, %s1238_s22 }
 0x487   : > { %671 = vrot.lane.b32.xlu0 %v1389_v28, %s1239_s23 }
 0x4d6   : > { %v538_v1 = vpop.xlane.xlu2 %537 }
 0x4d7   : > { %1152 = vrcp.f32 %v538_v1  ;;  %v1138_v1 = vld [vmem:[%s1505_s3] ss:$0 sm:$0xff] }
 0x4dd   : > { %v1153_v2 = vpop.eup %1152 }
 0x4de   : > { %v542_v3 = vpop.permute.xlu2 %541  ;;  %v540_v4 = vmul.f32 %v1153_v2, %v1147_v55  ;;  %v603_v5 = vpop.xlane.xlu1 %602 }
 0x4df   : > { %562 = vmatpush.msrb.mxu2 %v542_v3  ;;  %1154 = vrcp.f32 %v603_v5 }
 0x4e0   : > { %1016 = vmatmul.msk.f32.vlgmr.msrb.gmra.mxu2 %vm438_vm2, %v540_v4 }
 0x4e5   : > { %v1155_v7 = vpop.eup %1154 }
 0x4e6   : > { %v668_v6 = vpop.xlane.xlu0 %667  ;;  %v605_v9 = vmul.f32 %v1155_v7, %v1149_v60  ;;  %v1139_v7 = vld [vmem:[%s1504_s2 + $0x7] ss:$0 sm:$0xff] }
 0x4e7   : > { %1156 = vrcp.f32 %v668_v6 }
 0x4e8   : > { %1158 = vrcp.f32 %v1243_v32 }
 0x4ed   : > { %v1157_v8 = vpop.eup %1156 }
 0x4ee   : > { %v670_v11 = vmul.f32 %v1157_v8, %v1151_v63  ;;  %v1159_v33 = vpop.eup %1158  ;;  %v1073_v63 = vld [vmem:[%s1510_s8 + $0x8] sm:$0xff] }
 0x4ef   : > { %v756_v34 = vmul.f32 32.0, %v1159_v33  ;;  %vm760_vm5 = vweird.f32 %v1159_v33  ;;  %867 = vmatpush.bf16.msrb.mxu1 %v1073_v63 }
 0x4f1   : > { %v757_v35 = vsub.f32 1.0, %v756_v34 }
 0x4f3   : > { %v758_v36 = vmul.f32 %v1159_v33, %v757_v35  ;;  %868 = vmatpush.bf16.msrb.mxu1 %v1072_v0 }
 0x4f5   : > { %v759_v37 = vadd.f32 %v1159_v33, %v758_v36 }
 0x4f6   : > { %v607_v10 = vpop.permute.xlu1 %606 }
 0x4f7   : > { %627 = vmatpush.msra.mxu2 %v607_v10  ;;  %v761_v38 = vsel %vm760_vm5, %v1159_v33, %v759_v37 }
 0x4f8   : > { %1019 = vmatmul.msk.f32.vlgmr.msra.gmra.mxu2 %vm438_vm2, %v605_v9 }
 0x4f9   : > { %v672_v13 = vpop.permute.xlu0 %671  ;;  %742 = vmatpush.bf16.msrb.mxu2 %v1069_v17 }
 0x4fa   : > { %692 = vmatpush.msra.mxu3 %v672_v13 }
 0x4fb   : > { %1022 = vmatmul.msk.f32.vlgmr.msra.gmra.mxu3 %vm438_vm2, %v670_v11 }
 0x4fd   : > { %743 = vmatpush.bf16.msrb.mxu2 %v1068_v18 }
 0x563   : > { %v564_v14 = vpop.f32.mrf.mxu2 }
 0x564   : > { %698 = vrot.lane.b32.xlu2 %v564_v14, %s1240_s24  ;;  %s915_s24 = scalar_lea.hbm %s1511_s9, %s1059_s16 }
 0x565   : > { %s919_s28 = sshll.u32 %s915_s24, 4  ;;  %s920_s28 = int_to_ptr.hbm [resolvable:$true] %s919_s28 }
 0x566   : > { %s1178_s21 = sshra.s32 %s920_s28, 4  ;;  %s1179_s21 = int_to_ptr.hbm [resolvable:$true] %s1178_s21 }
 0x567   : > { %s1180_s16 = scalar_lea.hbm %s1179_s21, 8  ;;  %p1185_p0 = scmp.lt.s32.totalorder %s1179_s21, %s1511_s9 }
 0x568   : > { %p1181_p11 = scmp.ne.s32.totalorder %s1179_s21, %s1180_s16  ;;  %p1186_p1 = scmp.lt.s32.totalorder %s1184_s14, %s1180_s16 }
 0x56a   : > { %p1182_p12 = pnand %p1181_p11, %p1332_p5  ;;  %p1187_p2 = por %p1186_p1, %p1185_p0 }
 0x56c   : > { %p1183_p13 = pneg %p1182_p12 }
 0x56e   : > { %p1188_p3 = pnand %p1187_p2, %p1183_p13 }
 0x57b   : > { %v629_v15 = vpop.f32.mrf.mxu2 }
 0x57c   : > { %702 = vrot.lane.b32.xlu1 %v629_v15, %s1241_s25 }
 0x57e   : > { %v694_v16 = vpop.f32.mrf.mxu3 }
 0x57f   : > { %706 = vrot.lane.b32.xlu0 %v694_v16, %s1242_s26 }
 0x5be   : > { %v699_v19 = vpop.permute.xlu2 %698 }
 0x5bf   : > { %v709_v21 = vsel %vm438_vm2, %v1400_v43, %v699_v19 }
 0x5ee   : > { %v703_v20 = vpop.permute.xlu1 %702 }
 0x5ef   : > { %v711_v22 = vsel %vm710_vm3, %v709_v21, %v703_v20 }
 0x5f1   : > { %v707_v23 = vpop.permute.xlu0 %706 }
 0x5f2   : > { %v713_v24 = vsel %vm712_vm4, %v711_v22, %v707_v23 }
 0x5f3   : > { %v714_v25 = vpack.c.bf16 %v713_v24, %v713_v24 }
 0x5f5   : > { %1031 = vmatmul.msk.bf16.vlgmr.msrb.gmra.mxu2 %vm400_vm1, %v714_v25 }
 0x678   : > { %v745_v27 = vpop.f32.mrf.mxu2 }
 0x679   : > { %v746_v28 = vadd.f32 %v1135_v26, %v745_v27 }
 0x67b   : > { %v749_v29 = vadd.f32 %v746_v28, %v1375_v12  ;;  %v1071_v12 = vld [vmem:[%s1509_s7 + $0x8] sm:$0xff] }
 0x67c   : > { %815 = vmatpush.bf16.msrb.mxu0 %v1071_v12  ;;  %v1140_v28 = vld [vmem:[%s1504_s2 + $0x8] ss:$0 sm:$0xff] }
 0x67d   : > { %v752_v30 = vsel %vm400_vm1, %v749_v29, 0.0 }
 0x67e   : > { %753 = vadd.xlane.f32.xlu2 %v752_v30 }
 0x680   : > { %v747_v31 = vpop.f32.mrf.mxu2  ;;  %816 = vmatpush.bf16.msrb.mxu0 %v1070_v44 }
 0x681   : > { %v1141_v31 = vld [vmem:[%s1504_s2 + $0x9] ss:$0 sm:$0xff] }
 0x6f1   : > { %v754_v39 = vpop.xlane.xlu2 %753 }
 0x6f2   : > { %v762_v40 = vmul.f32 %v761_v38, %v754_v39 }
 0x6f4   : > { %v763_v41 = vsub.f32 %v749_v29, %v762_v40 }
 0x6f6   : > { %v764_v42 = vmul.f32 %v763_v41, %v763_v41 }
 0x6f8   : > { %v765_v43 = vsel %vm400_vm1, %v764_v42, 0.0 }
 0x6f9   : > { %766 = vadd.xlane.f32.xlu1 %v765_v43 }
 0x76c   : > { %v767_v46 = vpop.xlane.xlu1 %766 }
 0x76d   : > { %v768_v47 = vmul.f32 %v767_v46, %v761_v38 }
 0x76f   : > { %v769_v49 = vadd.f32 1e-05, %v768_v47 }
 0x771   : > { %1160 = vrsqrt.f32 %v769_v49  ;;  %vm776_vm7 = vweird.f32 %v769_v49 }
 0x777   : > { %v1161_v50 = vpop.eup %1160 }
 0x778   : > { %v771_v51 = vmul.f32 %v1161_v50, %v769_v49  ;;  %vm777_vm6 = vweird.f32 %v1161_v50 }
 0x779   : > { %vm778_vm8 = vmor %vm776_vm7, %vm777_vm6 }
 0x77a   : > { %v772_v52 = vmul.f32 %v1161_v50, %v771_v51 }
 0x77c   : > { %v773_v53 = vmul.f32 0.5, %v772_v52 }
 0x77e   : > { %v774_v54 = vsub.f32 1.5, %v773_v53 }
 0x780   : > { %v775_v55 = vmul.f32 %v1161_v50, %v774_v54 }
 0x782   : > { %v779_v57 = vsel %vm778_vm8, %v1161_v50, %v775_v55 }
 0x783   : > { %v780_v58 = vmul.f32 %v779_v57, %v763_v41 }
 0x785   : > { %v782_v60 = vmul.f32 %v1136_v56, %v780_v58 }
 0x787   : > { %v784_v61 = vadd.f32 %v1137_v59, %v782_v60 }
 0x789   : > { %v785_v62 = vpack.c.bf16 %v784_v61, %v784_v61 }
 0x78b   : > { %1040 = vmatmul.msk.bf16.vlgmr.msrb.gmra.mxu0 %vm400_vm1, %v785_v62 }
 0x808   : > { %v818_v2 = vpop.f32.mrf.mxu0 }
 0x809   : > { %v819_v3 = vadd.f32 %v1138_v1, %v818_v2 }
 0x80b   : > { %v822_v4 = vmax.f32 %v819_v3, 0.0 }
 0x80d   : > { %v823_v5 = vpack.c.bf16 %v822_v4, %v822_v4 }
 0x80f   : > { %1057 = vmatmul.msk.bf16.vlgmr.msrb.gmra.mxu1 %vm364_vm0, %v823_v5 }
 0x810   : > { %v820_v6 = vpop.f32.mrf.mxu0 }
 0x88c   : > { %v870_v8 = vpop.f32.mrf.mxu1 }
 0x88d   : > { %v871_v9 = vadd.f32 %v1139_v7, %v870_v8 }
 0x88f   : > { %v874_v10 = vadd.f32 %v871_v9, %v784_v61 }
 0x891   : > { %v877_v11 = vsel %vm400_vm1, %v874_v10, 0.0 }
 0x892   : > { %878 = vadd.xlane.f32.xlu0 %v877_v11 }
 0x894   : > { %v872_v13 = vpop.f32.mrf.mxu1 }
 0x905   : > { %v879_v14 = vpop.xlane.xlu0 %878 }
 0x906   : > { %v880_v15 = vmul.f32 %v879_v14, %v761_v38 }
 0x908   : > { %v881_v16 = vsub.f32 %v874_v10, %v880_v15 }
 0x90a   : > { %v882_v17 = vmul.f32 %v881_v16, %v881_v16 }
 0x90c   : > { %v883_v18 = vsel %vm400_vm1, %v882_v17, 0.0 }
 0x90d   : > { %884 = vadd.xlane.f32.xlu2 %v883_v18 }
 0x980   : > { %v885_v19 = vpop.xlane.xlu2 %884 }
 0x981   : > { %v886_v20 = vmul.f32 %v885_v19, %v761_v38 }
 0x983   : > { %v887_v21 = vadd.f32 1e-05, %v886_v20 }
 0x985   : > { %1162 = vrsqrt.f32 %v887_v21  ;;  %vm894_vm10 = vweird.f32 %v887_v21 }
 0x98b   : > { %v1163_v22 = vpop.eup %1162 }
 0x98c   : > { %v889_v23 = vmul.f32 %v1163_v22, %v887_v21  ;;  %vm895_vm9 = vweird.f32 %v1163_v22 }
 0x98d   : > { %vm896_vm11 = vmor %vm894_vm10, %vm895_vm9 }
 0x98e   : > { %v890_v24 = vmul.f32 %v1163_v22, %v889_v23 }
 0x990   : > { %v891_v25 = vmul.f32 0.5, %v890_v24 }
 0x992   : > { %v892_v26 = vsub.f32 1.5, %v891_v25 }
 0x994   : > { %v893_v27 = vmul.f32 %v1163_v22, %v892_v26 }
 0x996   : > { %v897_v29 = vsel %vm896_vm11, %v1163_v22, %v893_v27 }
 0x997   : > { %v898_v30 = vmul.f32 %v897_v29, %v881_v16 }
 0x999   : > { %v900_v32 = vmul.f32 %v1140_v28, %v898_v30 }
 0x99b   : > { %v902_v33 = vadd.f32 %v1141_v31, %v900_v32 }
 0x99d   : > { %903 = vst.msk [vmem:[%s323_s27] sm:$0xff] %vm400_vm1, %v902_v33 }
 0x99e   : > { %1191 = shalt.err (!%p1188_p3)
}
 0x99f   : > { %1076 = dma.vmem_to_hbm [thread:$0]  (%p1332_p5), %s918_s13, 128, %s920_s28, %s905_s17  }
 0x9a0 PF: > { %p1082_p4 = scmp.ge.s32.totalorder %s1226_s12, 2  ;;  %s931_s29 = sand.u32 1, %s1214_s30  }
 0x9a1   : > { %s932_s26 = scalar_lea.sflag [#allocation3], %s931_s29 }
 0x9a2   : > { %p1079_p7 = pnand %p1082_p4, %p1336_p6 }
 0x9a4   : > { %p1080_p8 = pneg %p1079_p7 }
 0x9a6   : > { %1209 = dma.done.wait (%p1080_p8), %s932_s26, 128  }
 0x9a7   : > { %1211 = vsyncadd (%p1080_p8), %s932_s26, 4294967168  ;;  %p19_p9 = scmp.ge.s32.totalorder %s1319_s15, 4   ;;  %s1514_s30 = smov %s1218_s10 }
 0x9a8   : > { %s1515_s10 = smov %s1222_s11  ;;  %s1516_s11 = smov %s1330_s18 }
 0x9a9   : > { %s1517_s12 = smov %s1319_s15  ;;  %21 = sbr.rel (!%p19_p9) target bundleno = 3 (0x3), region = 91 }
 0x9ae   :  { %938 = vsyncpa [#allocation3], 1 }
 0x9af   :  { %940 = vsyncpa [#allocation3 + $0x1], 1 }

// kernel: tpu_custom_call.1
= control target key start
LH: loop header
LB: loop body
LE: loop exit
PB: predicated region body
PF: predicated region fallthrough
CT: control target
= control target key end

     0   :  { %14 = vsyncpa [#allocation3], 0  ;;  %s1502_s0 = inlined_call_operand.vmem [shape: bf16[2,8,64], index: 0, kind: input, shape index: {}]   ;;  %s1503_s1 = inlined_call_operand.vmem [shape: f32[8,32], index: 1, kind: input, shape index: {}]   ;;  %s1504_s2 = inlined_call_operand.vmem [shape: f32[10,32], index: 2, kind: input, shape index: {}]   ;;  %s1505_s3 = inlined_call_operand.vmem [shape: f32[1,64], index: 3, kind: input, shape index: {}]   ;;  %s1506_s4 = inlined_call_operand.vmem [shape: bf16[64,32], index: 4, kind: input, shape index: {}]   ;;  %s1507_s5 = inlined_call_operand.vmem [shape: bf16[32,96], index: 5, kind: input, shape index: {}]   ;;  %s1508_s6 = inlined_call_operand.vmem [shape: bf16[32,32], index: 6, kind: input, shape index: {}]   ;;  %s1509_s7 = inlined_call_operand.vmem [shape: bf16[32,64], index: 7, kind: input, shape index: {}]   ;;  %s1510_s8 = inlined_call_operand.vmem [shape: bf16[64,32], index: 8, kind: input, shape index: {}]   ;;  %s1511_s9 = inlined_call_operand.hbm [shape: f32[2,8,32], index: 9, kind: output, shape index: {}]  }
   0x1   :  { %16 = vsyncpa [#allocation3 + $0x1], 0  ;;  %s1294_s30 = smov 0   ;;  %s1296_s10 = smov 0  }
   0x2   :  { %s1298_s11 = smov 0   ;;  %s1300_s12 = smov 0  }
   0x3 LB: > { %s1315_s13 = sadd.s32 4294967295, %s1226_s12   ;;  %s979_s14 = sadd.s32 4294967294, %s1226_s12   ;;  %s1226_s12 = sphi %s1300_s12, %s1517_s12   ;;  %s1222_s11 = sphi %s1298_s11, %s1516_s11   ;;  %s1218_s10 = sphi %s1296_s10, %s1515_s10   ;;  %s1214_s30 = sphi %s1294_s30, %s1514_s30  }
   0x4   : > { %s1319_s15 = sadd.s32 1, %s1226_s12   ;;  %s223_s16 = sadd.s32 1, %s1222_s11 }
   0x5   : > { %s220_s17 = ssub.s32 %s1226_s12, %s1319_s15  ;;  %p233_p0 = scmp.ne.s32.totalorder %s1222_s11, %s1218_s10 }
   0x6   : > { %p221_p1 = scmp.eq.s32.totalorder %s220_s17, 0  ;;  %p234_p2 = scmp.eq.s32.totalorder %s1315_s13, 1 }
   0x7   : > { %p239_p3 = scmp.ne.s32.totalorder %s1218_s10, %s1214_s30  ;;  %p240_p4 = scmp.eq.s32.totalorder %s979_s14, 1 }
   0x8   : > { %s1330_s18 = scalar_select %p221_p1, %s1222_s11, %s223_s16  }
   0x9   : > { %p1332_p5 = por %p234_p2, %p233_p0  ;;  %p1336_p6 = por %p240_p4, %p239_p3 }
   0xa   : > { %p982_p7 = scmp.ge.s32.totalorder %s1226_s12, 1  ;;  %p289_p8 = scmp.lt.s32.totalorder %s1226_s12, 3 }
   0xc   : > { %p290_p9 = pnand %p982_p7, %p289_p8 }
   0xd   : > { %p324_p10 = scmp.lt.s32.totalorder (!%p290_p9), %s1315_s13, 1  ;;  %s1230_s24 = smov (!%p290_p9), 88  }
   0xe   : > { %293 = sbr.rel (%p290_p9) target bundleno = 2464 (0x9a0), region = 56  ;;  %s1232_s26 = smov (!%p290_p9), 80  }
   0xf   : > { %s1233_s27 = smov (!%p290_p9), 104   ;;  %s1234_s14 = smov (!%p290_p9), 64  }
  0x10   : > { %s1235_s16 = smov (!%p290_p9), 72   ;;  %s1236_s17 = smov (!%p290_p9), 112  }
  0x11   : > { %s1238_s22 = smov (!%p290_p9), 48   ;;  %s1239_s23 = smov (!%p290_p9), 40  }
  0x12   : > { %s321_s29 = sand.u32 (!%p290_p9), 1, %s1218_s10  }
  0x13   : > { %v1065_v0 = vld [vmem:[%s1506_s4 + $0x18] sm:$0xff]  ;;  %v1064_v1 = vld [vmem:[%s1506_s4 + $0x10] sm:$0xff]  ;;  %s325_s25 = scalar_select %p324_p10, %s1315_s13, 1  ;;  %v1063_v2 = vld [vmem:[%s1506_s4 + $0x8] sm:$0xff]  ;;  %vm364_vm0 = vcmask 523264   ;;  %vm400_vm1 = vcmask 261120  }
  0x14   : > { %372 = vmatpush.bf16.msra.mxu0 %v1065_v0  ;;  %v1062_v3 = vld [vmem:[%s1506_s4] sm:$0xff]  ;;  %v1067_v5 = vld [vmem:[%s1507_s5 + $0x8] sm:$0xff]  ;;  %vm438_vm2 = vcmask 64512   ;;  %vm710_vm3 = vcmask 130048   ;;  %vm712_vm4 = vcmask 195584  }
  0x15   : > { %s984_s28 = sshll.u32 %s325_s25, 2  ;;  %410 = vmatpush.bf16.msra.mxu1 %v1067_v5  ;;  %v1066_v6 = vld [vmem:[%s1507_s5] sm:$0xff]  ;;  %s1231_s25 = smov 120  }
  0x16   : > { %s327_s21 = scalar_lea.vmem %s1502_s0, %s984_s28  ;;  %v1132_v7 = vld [vmem:[%s1504_s2 + $0x2] ss:$0 sm:$0xff]  ;;  %s1228_s28 = smov 32   ;;  %v1131_v8 = vld [vmem:[%s1504_s2] ss:$0 sm:$0xff] }
  0x17   : > { %v329_v4 = vld [vmem:[%s327_s21] sm:$0xf]  ;;  %424 = vrot.lane.b32.xlu0 %v1132_v7, %s1228_s28  ;;  %s1229_s21 = smov 96  }
  0x18   : > { %373 = vmatpush.bf16.msra.mxu0 %v1064_v1  ;;  %v381_v10 = vld [vmem:[%s1503_s1] sm:$0xff] }
  0x19   : > { %411 = vmatpush.bf16.msra.mxu1 %v1066_v6  ;;  %v1133_v19 = vld [vmem:[%s1504_s2 + $0x1] ss:$0 sm:$0xff]  ;;  %v1134_v25 = vld [vmem:[%s1504_s2 + $0x3] ss:$0 sm:$0xff] }
  0x1c   : > { %374 = vmatpush.bf16.msra.mxu0 %v1063_v2 }
  0x20   : > { %375 = vmatpush.bf16.msra.mxu0 %v1062_v3 }
  0x23   : > { %1001 = vmatmul.msk.bf16.vlgmr.msra.gmra.mxu0 %vm364_vm0, %v329_v4 }
  0x89   : > { %v425_v15 = vpop.permute.xlu0 %424 }
  0xa0   : > { %v377_v9 = vpop.f32.mrf.mxu0 }
  0xa1   : > { %v378_v11 = vadd.f32 %v1131_v8, %v377_v9 }
  0xa3   : > { %v1375_v12 = vadd.f32 %v381_v10, %v378_v11 }
  0xa5   : > { %v383_v13 = vpack.c.bf16 %v1375_v12, %v1375_v12 }
  0xa7   : > { %1010 = vmatmul.msk.bf16.vlgmr.msra.gmra.mxu1 %vm400_vm1, %v383_v13 }
  0xa8   : > { %v379_v14 = vpop.f32.mrf.mxu0 }
 0x124   : > { %v413_v16 = vpop.f32.mrf.mxu1 }
 0x125   : > { %v427_v17 = vadd.f32 %v425_v15, %v413_v16  ;;  %v419_v20 = vadd.f32 %v1133_v19, %v413_v16 }
 0x127   : > { %436 = vrot.lane.b32.xlu0 %v427_v17, %s1229_s21  ;;  %v420_v21 = vmul.f32 0.35355338, %v419_v20  ;;  %s1237_s21 = smov 56  }
 0x12c   : > { %v415_v18 = vpop.f32.mrf.mxu1 }
 0x12d   : > { %v1068_v18 = vld [vmem:[%s1508_s6] sm:$0xff] }
 0x12f   : > { %504 = vrot.lane.b32.xlu0 %v427_v17, %s1230_s24  ;;  %s1240_s24 = smov 8  }
 0x137   : > { %502 = vrot.lane.b32.xlu0 %v420_v21, %s1231_s25  ;;  %s1241_s25 = smov 16  }
 0x13f   : > { %569 = vrot.lane.b32.xlu0 %v427_v17, %s1232_s26  ;;  %s1242_s26 = smov 24  }
 0x147   : > { %632 = vrot.lane.b32.xlu0 %v420_v21, %s1233_s27 }
 0x199   : > { %v437_v22 = vpop.permute.xlu0 %436 }
 0x19a   : > { %1011 = vmatpush.xpose.msk.msra.mxu2 %vm438_vm2, %v437_v22 }
 0x19d   : > { %1012 = vmatmul.msk.f32.vlgmr.msra.gmra.mxu2 %vm438_vm2, %v420_v21 }
 0x1a1   : > { %v505_v34 = vpop.permute.xlu0 %504 }
 0x1a9   : > { %v503_v35 = vpop.permute.xlu0 %502 }
 0x1b1   : > { %v570_v39 = vpop.permute.xlu0 %569 }
 0x1b9   : > { %v633_v42 = vpop.permute.xlu0 %632 }
 0x220   : > { %v461_v23 = vpop.f32.mrf.mxu2 }
 0x221   : > { %v464_v24 = vsel %vm438_vm2, %v461_v23, -inf }
 0x222   : > { %465 = vmax.xlane.f32.xlu1 %v464_v24 }
 0x23b   : > { %431 = vrot.lane.b32.xlu1 %v1134_v25, %s1234_s14 }
 0x243   : > { %634 = vrot.lane.b32.xlu1 %v427_v17, %s1235_s16  ;;  %v1069_v17 = vld [vmem:[%s1508_s6 + $0x8] sm:$0xff]  ;;  %s1059_s16 = sshll.u32 %s1315_s13, 3 }
 0x295   : > { %v466_v26 = vpop.xlane.xlu1 %465 }
 0x296   : > { %v467_v29 = vsub.f32 %v461_v23, %v466_v26  ;;  %v1135_v26 = vld [vmem:[%s1504_s2 + $0x4] ss:$0 sm:$0xff] }
 0x298   : > { %v468_v30 = vmul.f32 1.442695, %v467_v29 }
 0x29a   : > { %1142 = vpow2.f32 %v468_v30 }
 0x2a0   : > { %v1143_v31 = vpop.eup %1142 }
 0x2a1   : > { %v470_v32 = vsel %vm438_vm2, %v1143_v31, 0.0 }
 0x2ad   : > { %v432_v27 = vpop.permute.xlu1 %431 }
 0x2ae   : > { %v1389_v28 = vadd.f32 %v432_v27, %v413_v16 }
 0x2b0   : > { %476 = vrot.lane.b32.xlu2 %v1389_v28, %s1234_s14  ;;  %s983_s14 = sshll.u32 %s321_s29, 3 }
 0x2b1   : > { %s323_s27 = scalar_lea.vmem [#allocation2], %s983_s14  ;;  %s1184_s14 = scalar_lea.hbm %s1511_s9, 16 }
 0x2b2   : > { %s917_s13 = sshll.u32 %s323_s27, 4  ;;  %s918_s13 = int_to_ptr.vmem [resolvable:$true] %s917_s13 }
 0x2b5   : > { %v635_v40 = vpop.permute.xlu1 %634 }
 0x2d9   : > { %471 = vadd.xlane.f32.xlu2 %v470_v32  ;;  %v1243_v32 = vmov 32.0  }
 0x2f1   : > { %567 = vrot.lane.b32.xlu2 %v420_v21, %s1236_s17  ;;  %s905_s17 = scalar_lea.sflag [#allocation3], %s321_s29 }
 0x30a   : > { %v477_v33 = vpop.permute.xlu2 %476 }
 0x30b   : > { %497 = vmatpush.msra.mxu3 %v477_v33 }
 0x30d   : > { %1014 = vmatpush.xpose.msk.msrb.mxu3 %vm438_vm2, %v505_v34 }
 0x34c   : > { %v472_v36 = vpop.xlane.xlu2 %471 }
 0x34d   : > { %1144 = vrcp.f32 %v472_v36 }
 0x353   : > { %v1145_v37 = vpop.eup %1144 }
 0x354   : > { %v474_v38 = vmul.f32 %v1145_v37, %v1143_v31  ;;  %v568_v41 = vpop.permute.xlu2 %567 }
 0x356   : > { %1013 = vmatmul.msk.f32.vlgmr.msra.gmra.mxu3 %vm438_vm2, %v474_v38 }
 0x357   : > { %1017 = vmatpush.xpose.msk.msra.mxu3 %vm438_vm2, %v570_v39 }
 0x35e   : > { %1015 = vmatmul.msk.f32.vlgmr.msrb.gmra.mxu3 %vm438_vm2, %v503_v35 }
 0x35f   : > { %1020 = vmatpush.xpose.msk.msrb.mxu3 %vm438_vm2, %v635_v40 }
 0x366   : > { %1018 = vmatmul.msk.f32.vlgmr.msra.gmra.mxu3 %vm438_vm2, %v568_v41 }
 0x36e   : > { %1021 = vmatmul.msk.f32.vlgmr.msrb.gmra.mxu3 %vm438_vm2, %v633_v42 }
 0x3d9   : > { %v1400_v43 = vpop.f32.mrf.mxu3 }
 0x3e1   : > { %v527_v44 = vpop.f32.mrf.mxu3 }
 0x3e2   : > { %v530_v45 = vsel %vm438_vm2, %v527_v44, -inf }
 0x3e3   : > { %531 = vmax.xlane.f32.xlu2 %v530_v45  ;;  %v1075_v45 = vld [vmem:[%s1510_s8 + $0x18] sm:$0xff] }
 0x3e4   : > { %865 = vmatpush.bf16.msrb.mxu1 %v1075_v45 }
 0x3e9   : > { %v592_v46 = vpop.f32.mrf.mxu3 }
 0x3ea   : > { %v595_v47 = vsel %vm438_vm2, %v592_v46, -inf }
 0x3eb   : > { %596 = vmax.xlane.f32.xlu1 %v595_v47 }
 0x3f1   : > { %v657_v48 = vpop.f32.mrf.mxu3 }
 0x3f2   : > { %v660_v49 = vsel %vm438_vm2, %v657_v48, -inf }
 0x3f3   : > { %661 = vmax.xlane.f32.xlu0 %v660_v49 }
 0x456   : > { %v532_v50 = vpop.xlane.xlu2 %531 }
 0x457   : > { %v533_v51 = vsub.f32 %v527_v44, %v532_v50  ;;  %v1070_v44 = vld [vmem:[%s1509_s7] sm:$0xff] }
 0x459   : > { %v534_v52 = vmul.f32 1.442695, %v533_v51 }
 0x45b   : > { %1146 = vpow2.f32 %v534_v52 }
 0x45e   : > { %v597_v53 = vpop.xlane.xlu1 %596 }
 0x45f   : > { %v598_v54 = vsub.f32 %v592_v46, %v597_v53 }
 0x461   : > { %v1147_v55 = vpop.eup %1146  ;;  %v599_v56 = vmul.f32 1.442695, %v598_v54 }
 0x462   : > { %v536_v57 = vsel %vm438_vm2, %v1147_v55, 0.0 }
 0x463   : > { %1148 = vpow2.f32 %v599_v56  ;;  %537 = vadd.xlane.f32.xlu2 %v536_v57  ;;  %v1136_v56 = vld [vmem:[%s1504_s2 + $0x5] ss:$0 sm:$0xff] }
 0x466   : > { %v662_v58 = vpop.xlane.xlu0 %661 }
 0x467   : > { %v663_v59 = vsub.f32 %v657_v48, %v662_v58  ;;  %v1074_v48 = vld [vmem:[%s1510_s8 + $0x10] sm:$0xff] }
 0x468   : > { %866 = vmatpush.bf16.msrb.mxu1 %v1074_v48 }
 0x469   : > { %v1149_v60 = vpop.eup %1148  ;;  %v664_v61 = vmul.f32 1.442695, %v663_v59  ;;  %v1137_v59 = vld [vmem:[%s1504_s2 + $0x6] ss:$0 sm:$0xff] }
 0x46a   : > { %v601_v62 = vsel %vm438_vm2, %v1149_v60, 0.0 }
 0x46b   : > { %1150 = vpow2.f32 %v664_v61  ;;  %602 = vadd.xlane.f32.xlu1 %v601_v62 }
 0x471   : > { %v1151_v63 = vpop.eup %1150 }
 0x472   : > { %v666_v0 = vsel %vm438_vm2, %v1151_v63, 0.0 }
 0x473   : > { %667 = vadd.xlane.f32.xlu0 %v666_v0  ;;  %v1072_v0 = vld [vmem:[%s1510_s8] sm:$0xff] }
 0x47b   : > { %541 = vrot.lane.b32.xlu2 %v1389_v28, %s1237_s21 }
 0x484   : > { %606 = vrot.lane.b32.xlu1 %v1389_v28, %s1238_s22 }
 0x487   : > { %671 = vrot.lane.b32.xlu0 %v1389_v28, %s1239_s23 }
 0x4d6   : > { %v538_v1 = vpop.xlane.xlu2 %537 }
 0x4d7   : > { %1152 = vrcp.f32 %v538_v1  ;;  %v1138_v1 = vld [vmem:[%s1505_s3] ss:$0 sm:$0xff] }
 0x4dd   : > { %v1153_v2 = vpop.eup %1152 }
 0x4de   : > { %v542_v3 = vpop.permute.xlu2 %541  ;;  %v540_v4 = vmul.f32 %v1153_v2, %v1147_v55  ;;  %v603_v5 = vpop.xlane.xlu1 %602 }
 0x4df   : > { %562 = vmatpush.msrb.mxu2 %v542_v3  ;;  %1154 = vrcp.f32 %v603_v5 }
 0x4e0   : > { %1016 = vmatmul.msk.f32.vlgmr.msrb.gmra.mxu2 %vm438_vm2, %v540_v4 }
 0x4e5   : > { %v1155_v7 = vpop.eup %1154 }
 0x4e6   : > { %v668_v6 = vpop.xlane.xlu0 %667  ;;  %v605_v9 = vmul.f32 %v1155_v7, %v1149_v60  ;;  %v1139_v7 = vld [vmem:[%s1504_s2 + $0x7] ss:$0 sm:$0xff] }
 0x4e7   : > { %1156 = vrcp.f32 %v668_v6 }
 0x4e8   : > { %1158 = vrcp.f32 %v1243_v32 }
 0x4ed   : > { %v1157_v8 = vpop.eup %1156 }
 0x4ee   : > { %v670_v11 = vmul.f32 %v1157_v8, %v1151_v63  ;;  %v1159_v33 = vpop.eup %1158  ;;  %v1073_v63 = vld [vmem:[%s1510_s8 + $0x8] sm:$0xff] }
 0x4ef   : > { %v756_v34 = vmul.f32 32.0, %v1159_v33  ;;  %vm760_vm5 = vweird.f32 %v1159_v33  ;;  %867 = vmatpush.bf16.msrb.mxu1 %v1073_v63 }
 0x4f1   : > { %v757_v35 = vsub.f32 1.0, %v756_v34 }
 0x4f3   : > { %v758_v36 = vmul.f32 %v1159_v33, %v757_v35  ;;  %868 = vmatpush.bf16.msrb.mxu1 %v1072_v0 }
 0x4f5   : > { %v759_v37 = vadd.f32 %v1159_v33, %v758_v36 }
 0x4f6   : > { %v607_v10 = vpop.permute.xlu1 %606 }
 0x4f7   : > { %627 = vmatpush.msra.mxu2 %v607_v10  ;;  %v761_v38 = vsel %vm760_vm5, %v1159_v33, %v759_v37 }
 0x4f8   : > { %1019 = vmatmul.msk.f32.vlgmr.msra.gmra.mxu2 %vm438_vm2, %v605_v9 }
 0x4f9   : > { %v672_v13 = vpop.permute.xlu0 %671  ;;  %742 = vmatpush.bf16.msrb.mxu2 %v1069_v17 }
 0x4fa   : > { %692 = vmatpush.msra.mxu3 %v672_v13 }
 0x4fb   : > { %1022 = vmatmul.msk.f32.vlgmr.msra.gmra.mxu3 %vm438_vm2, %v670_v11 }
 0x4fd   : > { %743 = vmatpush.bf16.msrb.mxu2 %v1068_v18 }
 0x563   : > { %v564_v14 = vpop.f32.mrf.mxu2 }
 0x564   : > { %698 = vrot.lane.b32.xlu2 %v564_v14, %s1240_s24  ;;  %s915_s24 = scalar_lea.hbm %s1511_s9, %s1059_s16 }
 0x565   : > { %s919_s28 = sshll.u32 %s915_s24, 4  ;;  %s920_s28 = int_to_ptr.hbm [resolvable:$true] %s919_s28 }
 0x566   : > { %s1178_s21 = sshra.s32 %s920_s28, 4  ;;  %s1179_s21 = int_to_ptr.hbm [resolvable:$true] %s1178_s21 }
 0x567   : > { %s1180_s16 = scalar_lea.hbm %s1179_s21, 8  ;;  %p1185_p0 = scmp.lt.s32.totalorder %s1179_s21, %s1511_s9 }
 0x568   : > { %p1181_p11 = scmp.ne.s32.totalorder %s1179_s21, %s1180_s16  ;;  %p1186_p1 = scmp.lt.s32.totalorder %s1184_s14, %s1180_s16 }
 0x56a   : > { %p1182_p12 = pnand %p1181_p11, %p1332_p5  ;;  %p1187_p2 = por %p1186_p1, %p1185_p0 }
 0x56c   : > { %p1183_p13 = pneg %p1182_p12 }
 0x56e   : > { %p1188_p3 = pnand %p1187_p2, %p1183_p13 }
 0x57b   : > { %v629_v15 = vpop.f32.mrf.mxu2 }
 0x57c   : > { %702 = vrot.lane.b32.xlu1 %v629_v15, %s1241_s25 }
 0x57e   : > { %v694_v16 = vpop.f32.mrf.mxu3 }
 0x57f   : > { %706 = vrot.lane.b32.xlu0 %v694_v16, %s1242_s26 }
 0x5be   : > { %v699_v19 = vpop.permute.xlu2 %698 }
 0x5bf   : > { %v709_v21 = vsel %vm438_vm2, %v1400_v43, %v699_v19 }
 0x5ee   : > { %v703_v20 = vpop.permute.xlu1 %702 }
 0x5ef   : > { %v711_v22 = vsel %vm710_vm3, %v709_v21, %v703_v20 }
 0x5f1   : > { %v707_v23 = vpop.permute.xlu0 %706 }
 0x5f2   : > { %v713_v24 = vsel %vm712_vm4, %v711_v22, %v707_v23 }
 0x5f3   : > { %v714_v25 = vpack.c.bf16 %v713_v24, %v713_v24 }
 0x5f5   : > { %1031 = vmatmul.msk.bf16.vlgmr.msrb.gmra.mxu2 %vm400_vm1, %v714_v25 }
 0x678   : > { %v745_v27 = vpop.f32.mrf.mxu2 }
 0x679   : > { %v746_v28 = vadd.f32 %v1135_v26, %v745_v27 }
 0x67b   : > { %v749_v29 = vadd.f32 %v746_v28, %v1375_v12  ;;  %v1071_v12 = vld [vmem:[%s1509_s7 + $0x8] sm:$0xff] }
 0x67c   : > { %815 = vmatpush.bf16.msrb.mxu0 %v1071_v12  ;;  %v1140_v28 = vld [vmem:[%s1504_s2 + $0x8] ss:$0 sm:$0xff] }
 0x67d   : > { %v752_v30 = vsel %vm400_vm1, %v749_v29, 0.0 }
 0x67e   : > { %753 = vadd.xlane.f32.xlu2 %v752_v30 }
 0x680   : > { %v747_v31 = vpop.f32.mrf.mxu2  ;;  %816 = vmatpush.bf16.msrb.mxu0 %v1070_v44 }
 0x681   : > { %v1141_v31 = vld [vmem:[%s1504_s2 + $0x9] ss:$0 sm:$0xff] }
 0x6f1   : > { %v754_v39 = vpop.xlane.xlu2 %753 }
 0x6f2   : > { %v762_v40 = vmul.f32 %v761_v38, %v754_v39 }
 0x6f4   : > { %v763_v41 = vsub.f32 %v749_v29, %v762_v40 }
 0x6f6   : > { %v764_v42 = vmul.f32 %v763_v41, %v763_v41 }
 0x6f8   : > { %v765_v43 = vsel %vm400_vm1, %v764_v42, 0.0 }
 0x6f9   : > { %766 = vadd.xlane.f32.xlu1 %v765_v43 }
 0x76c   : > { %v767_v46 = vpop.xlane.xlu1 %766 }
 0x76d   : > { %v768_v47 = vmul.f32 %v767_v46, %v761_v38 }
 0x76f   : > { %v769_v49 = vadd.f32 1e-05, %v768_v47 }
 0x771   : > { %1160 = vrsqrt.f32 %v769_v49  ;;  %vm776_vm7 = vweird.f32 %v769_v49 }
 0x777   : > { %v1161_v50 = vpop.eup %1160 }
 0x778   : > { %v771_v51 = vmul.f32 %v1161_v50, %v769_v49  ;;  %vm777_vm6 = vweird.f32 %v1161_v50 }
 0x779   : > { %vm778_vm8 = vmor %vm776_vm7, %vm777_vm6 }
 0x77a   : > { %v772_v52 = vmul.f32 %v1161_v50, %v771_v51 }
 0x77c   : > { %v773_v53 = vmul.f32 0.5, %v772_v52 }
 0x77e   : > { %v774_v54 = vsub.f32 1.5, %v773_v53 }
 0x780   : > { %v775_v55 = vmul.f32 %v1161_v50, %v774_v54 }
 0x782   : > { %v779_v57 = vsel %vm778_vm8, %v1161_v50, %v775_v55 }
 0x783   : > { %v780_v58 = vmul.f32 %v779_v57, %v763_v41 }
 0x785   : > { %v782_v60 = vmul.f32 %v1136_v56, %v780_v58 }
 0x787   : > { %v784_v61 = vadd.f32 %v1137_v59, %v782_v60 }
 0x789   : > { %v785_v62 = vpack.c.bf16 %v784_v61, %v784_v61 }
 0x78b   : > { %1040 = vmatmul.msk.bf16.vlgmr.msrb.gmra.mxu0 %vm400_vm1, %v785_v62 }
 0x808   : > { %v818_v2 = vpop.f32.mrf.mxu0 }
 0x809   : > { %v819_v3 = vadd.f32 %v1138_v1, %v818_v2 }
 0x80b   : > { %v822_v4 = vmax.f32 %v819_v3, 0.0 }
 0x80d   : > { %v823_v5 = vpack.c.bf16 %v822_v4, %v822_v4 }
 0x80f   : > { %1057 = vmatmul.msk.bf16.vlgmr.msrb.gmra.mxu1 %vm364_vm0, %v823_v5 }
 0x810   : > { %v820_v6 = vpop.f32.mrf.mxu0 }
 0x88c   : > { %v870_v8 = vpop.f32.mrf.mxu1 }
 0x88d   : > { %v871_v9 = vadd.f32 %v1139_v7, %v870_v8 }
 0x88f   : > { %v874_v10 = vadd.f32 %v871_v9, %v784_v61 }
 0x891   : > { %v877_v11 = vsel %vm400_vm1, %v874_v10, 0.0 }
 0x892   : > { %878 = vadd.xlane.f32.xlu0 %v877_v11 }
 0x894   : > { %v872_v13 = vpop.f32.mrf.mxu1 }
 0x905   : > { %v879_v14 = vpop.xlane.xlu0 %878 }
 0x906   : > { %v880_v15 = vmul.f32 %v879_v14, %v761_v38 }
 0x908   : > { %v881_v16 = vsub.f32 %v874_v10, %v880_v15 }
 0x90a   : > { %v882_v17 = vmul.f32 %v881_v16, %v881_v16 }
 0x90c   : > { %v883_v18 = vsel %vm400_vm1, %v882_v17, 0.0 }
 0x90d   : > { %884 = vadd.xlane.f32.xlu2 %v883_v18 }
 0x980   : > { %v885_v19 = vpop.xlane.xlu2 %884 }
 0x981   : > { %v886_v20 = vmul.f32 %v885_v19, %v761_v38 }
 0x983   : > { %v887_v21 = vadd.f32 1e-05, %v886_v20 }
 0x985   : > { %1162 = vrsqrt.f32 %v887_v21  ;;  %vm894_vm10 = vweird.f32 %v887_v21 }
 0x98b   : > { %v1163_v22 = vpop.eup %1162 }
 0x98c   : > { %v889_v23 = vmul.f32 %v1163_v22, %v887_v21  ;;  %vm895_vm9 = vweird.f32 %v1163_v22 }
 0x98d   : > { %vm896_vm11 = vmor %vm894_vm10, %vm895_vm9 }
 0x98e   : > { %v890_v24 = vmul.f32 %v1163_v22, %v889_v23 }
 0x990   : > { %v891_v25 = vmul.f32 0.5, %v890_v24 }
 0x992   : > { %v892_v26 = vsub.f32 1.5, %v891_v25 }
 0x994   : > { %v893_v27 = vmul.f32 %v1163_v22, %v892_v26 }
 0x996   : > { %v897_v29 = vsel %vm896_vm11, %v1163_v22, %v893_v27 }
 0x997   : > { %v898_v30 = vmul.f32 %v897_v29, %v881_v16 }
 0x999   : > { %v900_v32 = vmul.f32 %v1140_v28, %v898_v30 }
 0x99b   : > { %v902_v33 = vadd.f32 %v1141_v31, %v900_v32 }
 0x99d   : > { %903 = vst.msk [vmem:[%s323_s27] sm:$0xff] %vm400_vm1, %v902_v33 }
 0x99e   : > { %1191 = shalt.err (!%p1188_p3)
}
 0x99f   : > { %1076 = dma.vmem_to_hbm [thread:$0]  (%p1332_p5), %s918_s13, 128, %s920_s28, %s905_s17  }
 0x9a0 PF: > { %p1082_p4 = scmp.ge.s32.totalorder %s1226_s12, 2  ;;  %s931_s29 = sand.u32 1, %s1214_s30  }
 0x9a1   : > { %s932_s26 = scalar_lea.sflag [#allocation3], %s931_s29 }
 0x9a2   : > { %p1079_p7 = pnand %p1082_p4, %p1336_p6 }
 0x9a4   : > { %p1080_p8 = pneg %p1079_p7 }
 0x9a6   : > { %1209 = dma.done.wait (%p1080_p8), %s932_s26, 128  }
 0x9a7   : > { %1211 = vsyncadd (%p1080_p8), %s932_s26, 4294967168  ;;  %p19_p9 = scmp.ge.s32.totalorder %s1319_s15, 4   ;;  %s1514_s30 = smov %s1218_s10 }
 0x9a8   : > { %s1515_s10 = smov %s1222_s11  ;;  %s1516_s11 = smov %s1330_s18 }
 0x9a9   : > { %s1517_s12 = smov %s1319_s15  ;;  %21 = sbr.rel (!%p19_p9) target bundleno = 3 (0x3), region = 91 }
 0x9ae   :  { %938 = vsyncpa [#allocation3], 1 }
 0x9af   :  { %940 = vsyncpa [#allocation3 + $0x1], 1 }

</bundles_post_ra>
